<compile_context>
chip_gen: v5e
topology: v5e:2x2
jax: 0.10.0
libtpu: 0.0.40
codegen_flags: <defaults>
</compile_context>

<pallas_src>
import functools
import numpy as np
from itertools import product as iproduct

import jax
import jax.numpy as jnp
from jax import lax
from jax.experimental import pallas as pl
from jax.experimental.pallas import tpu as pltpu

NUM_CLASSES = 21
VMEM_LIMIT = 48 * 1024 * 1024     # safe on v5e/v6e (128 MiB) and v7x (64 MiB)
VMEM_BUDGET = 28 * 1024 * 1024    # target working-set per conv call


def _round_up(x, m):
    return (x + m - 1) // m * m


# ----------------------------------------------------------------------------
# Pallas kernels
# ----------------------------------------------------------------------------
def _conv_taps_kernel(cur_ref, halo_ref, w_ref, b_ref, o_ref, win_ref, *,
                      offsets, tm, relu):
    """Fused stride-1 conv: accumulate k*k shifted matmuls over a flat window.

    cur_ref/halo_ref: bf16 blocks of the flattened padded image.
    w_ref: (k*k, Cin, Cout) bf16 resident weights.  win_ref: f32 staging
    scratch (f32 keeps the sub-8-row shifted slices on the well-supported
    32-bit relayout path; operands are re-cast to bf16 right before the MXU).
    """
    win_ref[0:tm, :] = cur_ref[...].astype(jnp.float32)
    win_ref[tm:, :] = halo_ref[...].astype(jnp.float32)
    acc = None
    for t, off in enumerate(offsets):
        a = win_ref[off:off + tm, :].astype(jnp.bfloat16)
        part = jnp.dot(a, w_ref[t], preferred_element_type=jnp.float32)
        acc = part if acc is None else acc + part
    acc = acc + b_ref[...]
    if relu:
        acc = jnp.maximum(acc, 0.0)
    o_ref[...] = acc.astype(o_ref.dtype)


def _gemm_kernel(a_ref, b_ref, bias_ref, o_ref, *, relu):
    """GEMM with resident (full K, full N) weights, fused bias (+ReLU)."""
    acc = jnp.dot(a_ref[...], b_ref[...], preferred_element_type=jnp.float32)
    acc = acc + bias_ref[...]
    if relu:
        acc = jnp.maximum(acc, 0.0)
    o_ref[...] = acc.astype(o_ref.dtype)


def _l2norm_kernel(x_ref, w_ref, o_ref):
    x = x_ref[...].astype(jnp.float32)
    ssq = jnp.sum(x * x, axis=-1, keepdims=True)
    inv = pl.reciprocal(jnp.sqrt(ssq) + 1e-10, approx=True)
    o_ref[...] = (x * inv * w_ref[...]).astype(o_ref.dtype)


# ----------------------------------------------------------------------------
# Kernel wrappers
# ----------------------------------------------------------------------------
def _pick_tile(m_out, cin, cout, k, off_max, out_bytes):
    """Pick (TM, halo) so the working set stays within the VMEM budget."""
    off_pad = 256
    while off_pad < off_max:
        off_pad *= 2
    per_row = 14 * cin + 8 * cout + 2 * cout * out_bytes
    fixed = 2 * k * k * cin * cout * 2 + 10 * off_pad * cin
    cap = max(0, (VMEM_BUDGET - fixed)) // per_row
    cap = max(off_pad, min(2048, cap) // off_pad * off_pad)
    tm = min(cap, _round_up(m_out, off_pad))
    return max(tm, off_pad), off_pad


def _conv_s1_single(x_hwc, w_t, bias, k, pad, dil, relu, out_dtype):
    """Stride-1 conv on one NHWC image via flattened-window tap accumulation."""
    H, W, Cin = x_hwc.shape
    Cout = w_t.shape[-1]
    Hout = H + 2 * pad - dil * (k - 1)
    Wout = W + 2 * pad - dil * (k - 1)
    Wp = _round_up(W + 2 * pad, 8)
    off_max = (k - 1) * dil * (Wp + 1)
    m_out = Hout * Wp
    out_bytes = jnp.dtype(out_dtype).itemsize

    tm, off_pad = _pick_tile(m_out, Cin, Cout, k, off_max, out_bytes)
    nb = -(-m_out // tm)
    rows_needed = nb * tm + off_pad
    himg = max(H + 2 * pad, -(-rows_needed // Wp))
    xp = jnp.pad(x_hwc, ((pad, himg - H - pad), (pad, Wp - W - pad), (0, 0)))
    xf = xp.reshape(himg * Wp, Cin)            # flattened padded image (bf16)

    offsets = tuple(ki * dil * Wp + kj * dil
                    for ki in range(k) for kj in range(k))
    assert max(offsets) <= off_pad and tm % off_pad == 0
    r = tm // off_pad

    out = pl.pallas_call(
        functools.partial(_conv_taps_kernel, offsets=offsets, tm=tm, relu=relu),
        out_shape=jax.ShapeDtypeStruct((nb * tm, Cout), out_dtype),
        grid=(nb,),
        in_specs=[
            pl.BlockSpec((tm, Cin), lambda i: (i, 0)),                  # block
            pl.BlockSpec((off_pad, Cin), lambda i: ((i + 1) * r, 0)),   # halo
            pl.BlockSpec((k * k, Cin, Cout), lambda i: (0, 0, 0)),      # weights
            pl.BlockSpec((1, Cout), lambda i: (0, 0)),                  # bias
        ],
        out_specs=pl.BlockSpec((tm, Cout), lambda i: (i, 0)),
        scratch_shapes=[pltpu.VMEM((tm + off_pad, Cin), jnp.float32)],
        compiler_params=pltpu.CompilerParams(
            dimension_semantics=("parallel",),
            vmem_limit_bytes=VMEM_LIMIT),
    )(xf, xf, w_t, bias.reshape(1, Cout).astype(jnp.float32))

    out = out[:m_out].reshape(Hout, Wp, Cout)[:, :Wout, :]
    return out


def matmul_bias_act(a, bmat, bias, relu, out_dtype):
    """C = act(A @ B + bias) with resident bf16 weights (small-M GEMMs)."""
    M, K = a.shape
    N = bmat.shape[1]
    tm = min(512, _round_up(M, 8))
    Mp = _round_up(M, tm)
    a_p = jnp.pad(a.astype(jnp.bfloat16), ((0, Mp - M), (0, 0)))
    out = pl.pallas_call(
        functools.partial(_gemm_kernel, relu=relu),
        out_shape=jax.ShapeDtypeStruct((Mp, N), out_dtype),
        grid=(Mp // tm,),
        in_specs=[
            pl.BlockSpec((tm, K), lambda i: (i, 0)),
            pl.BlockSpec((K, N), lambda i: (0, 0)),
            pl.BlockSpec((1, N), lambda i: (0, 0)),
        ],
        out_specs=pl.BlockSpec((tm, N), lambda i: (i, 0)),
        compiler_params=pltpu.CompilerParams(
            dimension_semantics=("parallel",),
            vmem_limit_bytes=VMEM_LIMIT),
    )(a_p, bmat.astype(jnp.bfloat16), bias.reshape(1, N).astype(jnp.float32))
    return out[:M]


def l2norm(x_nhwc, weight):
    N, H, W, C = x_nhwc.shape
    M = N * H * W
    Mp = _round_up(M, 8)
    xf = jnp.pad(x_nhwc.reshape(M, C).astype(jnp.bfloat16),
                 ((0, Mp - M), (0, 0)))
    out = pl.pallas_call(
        _l2norm_kernel,
        out_shape=jax.ShapeDtypeStruct((Mp, C), jnp.bfloat16),
        grid=(1,),
        in_specs=[pl.BlockSpec((Mp, C), lambda i: (0, 0)),
                  pl.BlockSpec((1, C), lambda i: (0, 0))],
        out_specs=pl.BlockSpec((Mp, C), lambda i: (0, 0)),
        compiler_params=pltpu.CompilerParams(
            dimension_semantics=("arbitrary",),
            vmem_limit_bytes=VMEM_LIMIT),
    )(xf, weight.reshape(1, C).astype(jnp.float32))
    return out[:M].reshape(N, H, W, C)


# ----------------------------------------------------------------------------
# Conv / pool wrappers
# ----------------------------------------------------------------------------
def conv2d(x, w, b, stride=1, padding=0, dilation=1, relu=False,
           out_dtype=jnp.bfloat16):
    """x: NHWC, w: torch layout (Cout, Cin, kh, kw), b: (Cout,) f32."""
    N, H, W, Cin = x.shape
    Cout, _, kh, kw = w.shape
    x = x.astype(jnp.bfloat16)
    w = w.astype(jnp.bfloat16)

    if kh == 1 and stride == 1:                       # 1x1 conv == plain GEMM
        a = x.reshape(N * H * W, Cin)
        wmat = w.reshape(Cout, Cin).T
        out = matmul_bias_act(a, wmat, b, relu, out_dtype)
        return out.reshape(N, H, W, Cout)

    if stride == 1:                                   # fused tap-accum conv
        if Cin < 8:                                   # first conv: pad 3 -> 8
            cpad = 8 - Cin
            x = jnp.pad(x, ((0, 0), (0, 0), (0, 0), (0, cpad)))
            w = jnp.pad(w, ((0, 0), (0, cpad), (0, 0), (0, 0)))
            Cin = 8
        w_t = jnp.transpose(w, (2, 3, 1, 0)).reshape(kh * kw, Cin, Cout)
        outs = [_conv_s1_single(x[n], w_t, b, kh, padding, dilation, relu,
                                out_dtype) for n in range(N)]
        return jnp.stack(outs, axis=0)

    # Stride-2 3x3 convs (two tiny layers in `extras`): im2col + GEMM fallback.
    Ho = (H + 2 * padding - dilation * (kh - 1) - 1) // stride + 1
    Wo = (W + 2 * padding - dilation * (kw - 1) - 1) // stride + 1
    xp = jnp.pad(x, ((0, 0), (padding, padding), (padding, padding), (0, 0)))
    cols = []
    for ki in range(kh):
        for kj in range(kw):
            h0, w0 = ki * dilation, kj * dilation
            cols.append(xp[:, h0:h0 + (Ho - 1) * stride + 1:stride,
                              w0:w0 + (Wo - 1) * stride + 1:stride, :])
    a = jnp.stack(cols, axis=3).reshape(N * Ho * Wo, kh * kw * Cin)
    wmat = jnp.transpose(w, (2, 3, 1, 0)).reshape(kh * kw * Cin, Cout)
    out = matmul_bias_act(a, wmat, b, relu, out_dtype)
    return out.reshape(N, Ho, Wo, Cout)


def maxpool2d(x, kernel, stride, padding=0, ceil_mode=False):
    # Cheap pooling stays as JAX glue (reduce_window); convs dominate compute.
    N, H, W, C = x.shape

    def out_size(L):
        num = L + 2 * padding - kernel
        if ceil_mode:
            o = -(-num // stride) + 1
            if (o - 1) * stride >= L + padding:   # torch ceil_mode rule
                o -= 1
        else:
            o = num // stride + 1
        return o

    Ho, Wo = out_size(H), out_size(W)
    pad_h_hi = max(0, (Ho - 1) * stride + kernel - H - padding)
    pad_w_hi = max(0, (Wo - 1) * stride + kernel - W - padding)
    neg = jnp.array(-jnp.inf, x.dtype)
    return lax.reduce_window(
        x, neg, lax.max,
        window_dimensions=(1, kernel, kernel, 1),
        window_strides=(1, stride, stride, 1),
        padding=((0, 0), (padding, pad_h_hi), (padding, pad_w_hi), (0, 0)))


# ----------------------------------------------------------------------------
# Static architecture specs (mirror make_vgg / make_extras / make_loc / make_conf)
# ----------------------------------------------------------------------------
def _build_vgg_specs():
    cfg = [64, 64, 'M', 128, 128, 'M', 256, 256, 256, 'C',
           512, 512, 512, 'M', 512, 512, 512]
    specs, in_c, tidx = [], 3, 0
    for v in cfg:
        if v == 'M':
            specs.append(dict(kind='pool', k=2, s=2, pad=0, ceil=False, tidx=tidx)); tidx += 1
        elif v == 'C':
            specs.append(dict(kind='pool', k=2, s=2, pad=0, ceil=True, tidx=tidx)); tidx += 1
        else:
            specs.append(dict(kind='conv', cin=in_c, cout=v, k=3, pad=1, dil=1,
                              s=1, relu=True, tidx=tidx))
            tidx += 2
            in_c = v
    specs.append(dict(kind='pool', k=3, s=1, pad=1, ceil=False, tidx=tidx)); tidx += 1
    specs.append(dict(kind='conv', cin=512, cout=1024, k=3, pad=6, dil=6, s=1,
                      relu=True, tidx=tidx)); tidx += 2
    specs.append(dict(kind='conv', cin=1024, cout=1024, k=1, pad=0, dil=1, s=1,
                      relu=True, tidx=tidx)); tidx += 2
    return specs


VGG_SPECS = _build_vgg_specs()
VGG_SPECS_P1 = [s for s in VGG_SPECS if s['tidx'] < 23]   # vgg[0:23] in torch
VGG_SPECS_P2 = [s for s in VGG_SPECS if s['tidx'] >= 23]  # vgg[23:]

EXTRAS_SPECS = [
    dict(cin=1024, cout=256, k=1, pad=0, s=1),
    dict(cin=256,  cout=512, k=3, pad=1, s=2),
    dict(cin=512,  cout=128, k=1, pad=0, s=1),
    dict(cin=128,  cout=256, k=3, pad=1, s=2),
    dict(cin=256,  cout=128, k=1, pad=0, s=1),
    dict(cin=128,  cout=256, k=3, pad=0, s=1),
    dict(cin=256,  cout=128, k=1, pad=0, s=1),
    dict(cin=128,  cout=256, k=3, pad=0, s=1),
]

LOC_SPECS = [dict(cin=c, cout=n * 4, k=3, pad=1, s=1)
             for c, n in [(512, 4), (1024, 6), (512, 6), (256, 6), (256, 4), (256, 4)]]
CONF_SPECS = [dict(cin=c, cout=n * NUM_CLASSES, k=3, pad=1, s=1)
              for c, n in [(512, 4), (1024, 6), (512, 6), (256, 6), (256, 4), (256, 4)]]


# ----------------------------------------------------------------------------
# Parameters (deterministic He-normal init; the real module loads VGG weights)
# ----------------------------------------------------------------------------
def _init_conv(key, cin, cout, k):
    fan_in = cin * k * k
    std = np.sqrt(2.0 / fan_in).astype(np.float32)
    w = std * jax.random.normal(key, (cout, cin, k, k), jnp.float32)
    b = jnp.zeros((cout,), jnp.float32)
    return {'w': w, 'b': b}


def init_params(seed=0):
    base = jax.random.PRNGKey(seed)
    cnt = [0]

    def nk():
        cnt[0] += 1
        return jax.random.fold_in(base, cnt[0])

    params = {'vgg': [], 'extras': [], 'loc': [], 'conf': []}
    for s in VGG_SPECS:
        if s['kind'] == 'conv':
            params['vgg'].append(_init_conv(nk(), s['cin'], s['cout'], s['k']))
    for s in EXTRAS_SPECS:
        params['extras'].append(_init_conv(nk(), s['cin'], s['cout'], s['k']))
    for s in LOC_SPECS:
        params['loc'].append(_init_conv(nk(), s['cin'], s['cout'], s['k']))
    for s in CONF_SPECS:
        params['conf'].append(_init_conv(nk(), s['cin'], s['cout'], s['k']))
    params['l2norm_w'] = jnp.full((512,), 20.0, jnp.float32)  # L2Norm scale=20
    return params


# ----------------------------------------------------------------------------
# DBox (plain numpy glue — constant, faithful to DBox.make_dbox_list)
# ----------------------------------------------------------------------------
def make_dbox_list(config):
    image_size = config['image_size']
    boxes = []
    for sid in range(6):
        scale_ratio = image_size / config['region_sizes'][sid]
        f = config['feature_map_regions'][sid]
        for i, j in iproduct(range(f), repeat=2):
            cx = (j + 0.5) / scale_ratio
            cy = (i + 0.5) / scale_ratio
            min_size = config['min_sizes'][sid]
            s_k = min_size / image_size
            boxes.append([cx, cy, s_k, s_k])
            max_size = config['max_sizes'][sid]
            s_k_prime = s_k * np.sqrt(max_size / min_size)
            boxes.append([cx, cy, s_k_prime, s_k_prime])
            for ar in config['aspect_ratios'][sid]:
                sq = np.sqrt(ar)
                boxes.append([cx, cy, s_k * sq, s_k / sq])
                boxes.append([cx, cy, s_k / sq, s_k * sq])
    arr = np.clip(np.asarray(boxes, dtype=np.float32), 0.0, 1.0)
    return jnp.asarray(arr)


# ----------------------------------------------------------------------------
# SSD forward (phase='train': returns (loc, conf); dbox_list built separately)
# ----------------------------------------------------------------------------
def _run_layers(x, specs, conv_params, conv_idx):
    for s in specs:
        if s['kind'] == 'conv':
            p = conv_params[conv_idx]
            conv_idx += 1
            x = conv2d(x, p['w'], p['b'], stride=s['s'], padding=s['pad'],
                       dilation=s['dil'], relu=s['relu'])
        else:
            x = maxpool2d(x, s['k'], s['s'], s['pad'], s['ceil'])
    return x, conv_idx


def ssd_forward(params, x_nchw):
    x = jnp.transpose(x_nchw, (0, 2, 3, 1)).astype(jnp.bfloat16)  # NCHW -> NHWC
    B = x_nchw.shape[0]

    x, ci = _run_layers(x, VGG_SPECS_P1, params['vgg'], 0)
    source1 = l2norm(x, params['l2norm_w'])
    x, _ = _run_layers(x, VGG_SPECS_P2, params['vgg'], ci)
    sources = [source1, x]

    for i, s in enumerate(EXTRAS_SPECS):
        p = params['extras'][i]
        x = conv2d(x, p['w'], p['b'], stride=s['s'], padding=s['pad'],
                   dilation=1, relu=True)
        if i % 2 == 1:
            sources.append(x)

    locs, confs = [], []
    for i, src in enumerate(sources):
        lp, cp = params['loc'][i], params['conf'][i]
        n_loc = lp['w'].shape[0]
        # Fused loc+conf head: one conv per source, split channels afterwards.
        w_cat = jnp.concatenate([lp['w'], cp['w']], axis=0)
        b_cat = jnp.concatenate([lp['b'], cp['b']], axis=0)
        out = conv2d(src, w_cat, b_cat, stride=1, padding=1, relu=False,
                     out_dtype=jnp.float32)
        # NHWC conv output == torch .permute(0, 2, 3, 1).contiguous()
        locs.append(out[..., :n_loc].reshape(B, -1))
        confs.append(out[..., n_loc:].reshape(B, -1))

    loc = jnp.concatenate(locs, axis=1).reshape(B, -1, 4)
    conf = jnp.concatenate(confs, axis=1).reshape(B, -1, NUM_CLASSES)
    return loc, conf
    # TODO(synk): inference-phase Detect (softmax + decode + per-class NMS loop)
    # is data-dependent host-style control flow; not implemented as a kernel.


# ----------------------------------------------------------------------------
# Tiny self-check of the fused conv kernel against lax.conv_general_dilated
# ----------------------------------------------------------------------------
def _self_check():
    base = jax.random.PRNGKey(0)
    for idx, (H, W, Cin, Cout, k, p, d) in enumerate(
            [(9, 7, 8, 16, 3, 1, 1),
             (11, 10, 8, 8, 3, 0, 1),
             (13, 9, 8, 8, 3, 2, 2)]):
        kk = jax.random.fold_in(base, 1000 + idx)
        k1, k2, k3 = jax.random.split(kk, 3)
        x = jax.random.normal(k1, (1, H, W, Cin), jnp.float32)
        w = 0.1 * jax.random.normal(k2, (Cout, Cin, k, k), jnp.float32)
        b = 0.1 * jax.random.normal(k3, (Cout,), jnp.float32)
        got = conv2d(x, w, b, stride=1, padding=p, dilation=d, relu=False,
                     out_dtype=jnp.float32)
        ref = lax.conv_general_dilated(
            x, jnp.transpose(w, (2, 3, 1, 0)),
            window_strides=(1, 1), padding=[(p, p), (p, p)],
            rhs_dilation=(d, d),
            dimension_numbers=('NHWC', 'HWIO', 'NHWC')) + b
        err = float(jnp.max(jnp.abs(got - ref)))
        assert err < 5e-2, err


if __name__ == "__main__":
    config = {
        'num_classes': NUM_CLASSES,
        'image_size': 300,
        'feature_map_regions': [38, 19, 10, 5, 3, 1],
        'region_sizes': [8, 16, 32, 64, 100, 300],
        'min_sizes': [30, 60, 111, 162, 213, 264],
        'max_sizes': [60, 111, 162, 213, 264, 315],
        'aspect_ratios': [[2], [2, 3], [2, 3], [2, 3], [2], [2]],
    }
    dbox_list = make_dbox_list(config)
    params = init_params(0)

    _self_check()

    # Smallest input consistent with the architecture is ~268; use canonical 300.
    x = jax.random.normal(jax.random.PRNGKey(0), (1, 3, 300, 300), jnp.float32)

    fwd = jax.jit(ssd_forward)
    loc, conf = fwd(params, x)
    jax.block_until_ready((loc, conf, dbox_list))

    assert loc.shape == (1, 8732, 4), loc.shape
    assert conf.shape == (1, 8732, NUM_CLASSES), conf.shape
    assert dbox_list.shape == (8732, 4), dbox_list.shape
    assert bool(jnp.isfinite(loc).all()) and bool(jnp.isfinite(conf).all())
    print("KERNEL_OK")
</pallas_src>

<mosaic_0001>
module attributes {stable_mosaic.version = 11 : i64} {
  func.func @_conv_taps_kernel(%arg0: i32, %arg1: memref<256x8xbf16, #tpu.memory_space<vmem>>, %arg2: memref<256x8xbf16, #tpu.memory_space<vmem>>, %arg3: memref<9x8x16xbf16, #tpu.memory_space<vmem>>, %arg4: memref<1x16xf32, #tpu.memory_space<vmem>>, %arg5: memref<256x16xf32, #tpu.memory_space<vmem>>, %arg6: memref<512x8xf32, #tpu.memory_space<vmem>>) attributes {dimension_semantics = [#tpu.dimension_semantics<parallel>], iteration_bounds = array<i64: 1>, scalar_prefetch = 0 : i64, scratch_operands = 1 : i64, tpu.core_type = #tpu.core_type<tc>, window_params = [{transform_indices = @transform_0, window_bounds = array<i64: 256, 8>}, {transform_indices = @transform_1, window_bounds = array<i64: 256, 8>}, {pipeline_mode = #tpu.pipeline_mode<synchronous>, transform_indices = @transform_2, window_bounds = array<i64: 9, 8, 16>}, {pipeline_mode = #tpu.pipeline_mode<synchronous>, transform_indices = @transform_3, window_bounds = array<i64: 1, 16>}, {transform_indices = @transform_4, window_bounds = array<i64: 256, 16>}]} {
    %c0 = arith.constant 0 : index
    %c0_0 = arith.constant 0 : index
    %0 = vector.load %arg1[%c0, %c0_0] : memref<256x8xbf16, #tpu.memory_space<vmem>>, vector<256x8xbf16>
    %1 = arith.extf %0 : vector<256x8xbf16> to vector<256x8xf32>
    %c0_1 = arith.constant 0 : index
    %c0_2 = arith.constant 0 : index
    %2 = vector.load %arg6[%c0_1, %c0_2] : memref<512x8xf32, #tpu.memory_space<vmem>>, vector<256x8xf32>
    tpu.vector_store %arg6[%c0_1, %c0_2], %1 {strides = array<i32>} : memref<512x8xf32, #tpu.memory_space<vmem>>, vector<256x8xf32>,
    %c0_3 = arith.constant 0 : index
    %c0_4 = arith.constant 0 : index
    %3 = vector.load %arg2[%c0_3, %c0_4] : memref<256x8xbf16, #tpu.memory_space<vmem>>, vector<256x8xbf16>
    %4 = arith.extf %3 : vector<256x8xbf16> to vector<256x8xf32>
    %c256 = arith.constant 256 : index
    %c0_5 = arith.constant 0 : index
    %5 = vector.load %arg6[%c256, %c0_5] : memref<512x8xf32, #tpu.memory_space<vmem>>, vector<256x8xf32>
    tpu.vector_store %arg6[%c256, %c0_5], %4 {strides = array<i32>} : memref<512x8xf32, #tpu.memory_space<vmem>>, vector<256x8xf32>,
    %c0_6 = arith.constant 0 : index
    %c0_7 = arith.constant 0 : index
    %6 = vector.load %arg6[%c0_6, %c0_7] : memref<512x8xf32, #tpu.memory_space<vmem>>, vector<256x8xf32>
    %7 = arith.truncf %6 : vector<256x8xf32> to vector<256x8xbf16>
    %c0_8 = arith.constant 0 : index
    %c0_9 = arith.constant 0 : index
    %c0_10 = arith.constant 0 : index
    %8 = vector.load %arg3[%c0_8, %c0_9, %c0_10] : memref<9x8x16xbf16, #tpu.memory_space<vmem>>, vector<1x8x16xbf16>
    %9 = vector.shape_cast %8 : vector<1x8x16xbf16> to vector<8x16xbf16>
    %cst = arith.constant dense<0.000000e+00> : vector<256x16xf32>
    %10 = tpu.matmul %7, %9, %cst {dimension_numbers = #tpu.dot_dimension_numbers<[1], [0], [0], [1], [0, 0, 1, 1], [], []>} : vector<256x8xbf16>, vector<8x16xbf16>, vector<256x16xf32> -> vector<256x16xf32>
    %c1 = arith.constant 1 : index
    %c0_11 = arith.constant 0 : index
    %11 = vector.load %arg6[%c1, %c0_11] : memref<512x8xf32, #tpu.memory_space<vmem>>, vector<256x8xf32>
    %12 = arith.truncf %11 : vector<256x8xf32> to vector<256x8xbf16>
    %c1_12 = arith.constant 1 : index
    %c0_13 = arith.constant 0 : index
    %c0_14 = arith.constant 0 : index
    %13 = vector.load %arg3[%c1_12, %c0_13, %c0_14] : memref<9x8x16xbf16, #tpu.memory_space<vmem>>, vector<1x8x16xbf16>
    %14 = vector.shape_cast %13 : vector<1x8x16xbf16> to vector<8x16xbf16>
    %cst_15 = arith.constant dense<0.000000e+00> : vector<256x16xf32>
    %15 = tpu.matmul %12, %14, %cst_15 {dimension_numbers = #tpu.dot_dimension_numbers<[1], [0], [0], [1], [0, 0, 1, 1], [], []>} : vector<256x8xbf16>, vector<8x16xbf16>, vector<256x16xf32> -> vector<256x16xf32>
    %16 = arith.addf %10, %15 : vector<256x16xf32>
    %c2 = arith.constant 2 : index
    %c0_16 = arith.constant 0 : index
    %17 = vector.load %arg6[%c2, %c0_16] : memref<512x8xf32, #tpu.memory_space<vmem>>, vector<256x8xf32>
    %18 = arith.truncf %17 : vector<256x8xf32> to vector<256x8xbf16>
    %c2_17 = arith.constant 2 : index
    %c0_18 = arith.constant 0 : index
    %c0_19 = arith.constant 0 : index
    %19 = vector.load %arg3[%c2_17, %c0_18, %c0_19] : memref<9x8x16xbf16, #tpu.memory_space<vmem>>, vector<1x8x16xbf16>
    %20 = vector.shape_cast %19 : vector<1x8x16xbf16> to vector<8x16xbf16>
    %cst_20 = arith.constant dense<0.000000e+00> : vector<256x16xf32>
    %21 = tpu.matmul %18, %20, %cst_20 {dimension_numbers = #tpu.dot_dimension_numbers<[1], [0], [0], [1], [0, 0, 1, 1], [], []>} : vector<256x8xbf16>, vector<8x16xbf16>, vector<256x16xf32> -> vector<256x16xf32>
    %22 = arith.addf %16, %21 : vector<256x16xf32>
    %c16 = arith.constant 16 : index
    %c0_21 = arith.constant 0 : index
    %23 = vector.load %arg6[%c16, %c0_21] : memref<512x8xf32, #tpu.memory_space<vmem>>, vector<256x8xf32>
    %24 = arith.truncf %23 : vector<256x8xf32> to vector<256x8xbf16>
    %c3 = arith.constant 3 : index
    %c0_22 = arith.constant 0 : index
    %c0_23 = arith.constant 0 : index
    %25 = vector.load %arg3[%c3, %c0_22, %c0_23] : memref<9x8x16xbf16, #tpu.memory_space<vmem>>, vector<1x8x16xbf16>
    %26 = vector.shape_cast %25 : vector<1x8x16xbf16> to vector<8x16xbf16>
    %cst_24 = arith.constant dense<0.000000e+00> : vector<256x16xf32>
    %27 = tpu.matmul %24, %26, %cst_24 {dimension_numbers = #tpu.dot_dimension_numbers<[1], [0], [0], [1], [0, 0, 1, 1], [], []>} : vector<256x8xbf16>, vector<8x16xbf16>, vector<256x16xf32> -> vector<256x16xf32>
    %28 = arith.addf %22, %27 : vector<256x16xf32>
    %c17 = arith.constant 17 : index
    %c0_25 = arith.constant 0 : index
    %29 = vector.load %arg6[%c17, %c0_25] : memref<512x8xf32, #tpu.memory_space<vmem>>, vector<256x8xf32>
    %30 = arith.truncf %29 : vector<256x8xf32> to vector<256x8xbf16>
    %c4 = arith.constant 4 : index
    %c0_26 = arith.constant 0 : index
    %c0_27 = arith.constant 0 : index
    %31 = vector.load %arg3[%c4, %c0_26, %c0_27] : memref<9x8x16xbf16, #tpu.memory_space<vmem>>, vector<1x8x16xbf16>
    %32 = vector.shape_cast %31 : vector<1x8x16xbf16> to vector<8x16xbf16>
    %cst_28 = arith.constant dense<0.000000e+00> : vector<256x16xf32>
    %33 = tpu.matmul %30, %32, %cst_28 {dimension_numbers = #tpu.dot_dimension_numbers<[1], [0], [0], [1], [0, 0, 1, 1], [], []>} : vector<256x8xbf16>, vector<8x16xbf16>, vector<256x16xf32> -> vector<256x16xf32>
    %34 = arith.addf %28, %33 : vector<256x16xf32>
    %c18 = arith.constant 18 : index
    %c0_29 = arith.constant 0 : index
    %35 = vector.load %arg6[%c18, %c0_29] : memref<512x8xf32, #tpu.memory_space<vmem>>, vector<256x8xf32>
    %36 = arith.truncf %35 : vector<256x8xf32> to vector<256x8xbf16>
    %c5 = arith.constant 5 : index
    %c0_30 = arith.constant 0 : index
    %c0_31 = arith.constant 0 : index
    %37 = vector.load %arg3[%c5, %c0_30, %c0_31] : memref<9x8x16xbf16, #tpu.memory_space<vmem>>, vector<1x8x16xbf16>
    %38 = vector.shape_cast %37 : vector<1x8x16xbf16> to vector<8x16xbf16>
    %cst_32 = arith.constant dense<0.000000e+00> : vector<256x16xf32>
    %39 = tpu.matmul %36, %38, %cst_32 {dimension_numbers = #tpu.dot_dimension_numbers<[1], [0], [0], [1], [0, 0, 1, 1], [], []>} : vector<256x8xbf16>, vector<8x16xbf16>, vector<256x16xf32> -> vector<256x16xf32>
    %40 = arith.addf %34, %39 : vector<256x16xf32>
    %c32 = arith.constant 32 : index
    %c0_33 = arith.constant 0 : index
    %41 = vector.load %arg6[%c32, %c0_33] : memref<512x8xf32, #tpu.memory_space<vmem>>, vector<256x8xf32>
    %42 = arith.truncf %41 : vector<256x8xf32> to vector<256x8xbf16>
    %c6 = arith.constant 6 : index
    %c0_34 = arith.constant 0 : index
    %c0_35 = arith.constant 0 : index
    %43 = vector.load %arg3[%c6, %c0_34, %c0_35] : memref<9x8x16xbf16, #tpu.memory_space<vmem>>, vector<1x8x16xbf16>
    %44 = vector.shape_cast %43 : vector<1x8x16xbf16> to vector<8x16xbf16>
    %cst_36 = arith.constant dense<0.000000e+00> : vector<256x16xf32>
    %45 = tpu.matmul %42, %44, %cst_36 {dimension_numbers = #tpu.dot_dimension_numbers<[1], [0], [0], [1], [0, 0, 1, 1], [], []>} : vector<256x8xbf16>, vector<8x16xbf16>, vector<256x16xf32> -> vector<256x16xf32>
    %46 = arith.addf %40, %45 : vector<256x16xf32>
    %c33 = arith.constant 33 : index
    %c0_37 = arith.constant 0 : index
    %47 = vector.load %arg6[%c33, %c0_37] : memref<512x8xf32, #tpu.memory_space<vmem>>, vector<256x8xf32>
    %48 = arith.truncf %47 : vector<256x8xf32> to vector<256x8xbf16>
    %c7 = arith.constant 7 : index
    %c0_38 = arith.constant 0 : index
    %c0_39 = arith.constant 0 : index
    %49 = vector.load %arg3[%c7, %c0_38, %c0_39] : memref<9x8x16xbf16, #tpu.memory_space<vmem>>, vector<1x8x16xbf16>
    %50 = vector.shape_cast %49 : vector<1x8x16xbf16> to vector<8x16xbf16>
    %cst_40 = arith.constant dense<0.000000e+00> : vector<256x16xf32>
    %51 = tpu.matmul %48, %50, %cst_40 {dimension_numbers = #tpu.dot_dimension_numbers<[1], [0], [0], [1], [0, 0, 1, 1], [], []>} : vector<256x8xbf16>, vector<8x16xbf16>, vector<256x16xf32> -> vector<256x16xf32>
    %52 = arith.addf %46, %51 : vector<256x16xf32>
    %c34 = arith.constant 34 : index
    %c0_41 = arith.constant 0 : index
    %53 = vector.load %arg6[%c34, %c0_41] : memref<512x8xf32, #tpu.memory_space<vmem>>, vector<256x8xf32>
    %54 = arith.truncf %53 : vector<256x8xf32> to vector<256x8xbf16>
    %c8 = arith.constant 8 : index
    %c0_42 = arith.constant 0 : index
    %c0_43 = arith.constant 0 : index
    %55 = vector.load %arg3[%c8, %c0_42, %c0_43] : memref<9x8x16xbf16, #tpu.memory_space<vmem>>, vector<1x8x16xbf16>
    %56 = vector.shape_cast %55 : vector<1x8x16xbf16> to vector<8x16xbf16>
    %cst_44 = arith.constant dense<0.000000e+00> : vector<256x16xf32>
    %57 = tpu.matmul %54, %56, %cst_44 {dimension_numbers = #tpu.dot_dimension_numbers<[1], [0], [0], [1], [0, 0, 1, 1], [], []>} : vector<256x8xbf16>, vector<8x16xbf16>, vector<256x16xf32> -> vector<256x16xf32>
    %58 = arith.addf %52, %57 : vector<256x16xf32>
    %c0_45 = arith.constant 0 : index
    %c0_46 = arith.constant 0 : index
    %59 = vector.load %arg4[%c0_45, %c0_46] : memref<1x16xf32, #tpu.memory_space<vmem>>, vector<1x16xf32>
    %60 = vector.broadcast %59 : vector<1x16xf32> to vector<256x16xf32>
    %61 = arith.addf %58, %60 : vector<256x16xf32>
    %c0_47 = arith.constant 0 : index
    %c0_48 = arith.constant 0 : index
    %62 = vector.load %arg5[%c0_47, %c0_48] : memref<256x16xf32, #tpu.memory_space<vmem>>, vector<256x16xf32>
    tpu.vector_store %arg5[%c0_47, %c0_48], %61 {strides = array<i32>} : memref<256x16xf32, #tpu.memory_space<vmem>>, vector<256x16xf32>,
    return
  }
  func.func @transform_0(%arg0: i32) -> (i32, i32) {
    %c0_i32 = arith.constant 0 : i32
    %c0_i32_0 = arith.constant 0 : i32
    return %arg0, %c0_i32 : i32, i32
  }
  func.func @transform_1(%arg0: i32) -> (i32, i32) {
    %c1_i32 = arith.constant 1 : i32
    %0 = arith.addi %arg0, %c1_i32 : i32
    %c1_i32_0 = arith.constant 1 : i32
    %1 = arith.muli %0, %c1_i32_0 : i32
    %c0_i32 = arith.constant 0 : i32
    %c0_i32_1 = arith.constant 0 : i32
    return %1, %c0_i32 : i32, i32
  }
  func.func @transform_2(%arg0: i32) -> (i32, i32, i32) {
    %c0_i32 = arith.constant 0 : i32
    %c0_i32_0 = arith.constant 0 : i32
    %c0_i32_1 = arith.constant 0 : i32
    %c0_i32_2 = arith.constant 0 : i32
    return %c0_i32, %c0_i32_0, %c0_i32_1 : i32, i32, i32
  }
  func.func @transform_3(%arg0: i32) -> (i32, i32) {
    %c0_i32 = arith.constant 0 : i32
    %c0_i32_0 = arith.constant 0 : i32
    %c0_i32_1 = arith.constant 0 : i32
    return %c0_i32, %c0_i32_0 : i32, i32
  }
  func.func @transform_4(%arg0: i32) -> (i32, i32) {
    %c0_i32 = arith.constant 0 : i32
    %c0_i32_0 = arith.constant 0 : i32
    return %arg0, %c0_i32 : i32, i32
  }
}

</mosaic_0001>

<bundles_post_ra>
// kernel: tpu_custom_call.1
= control target key start
LH: loop header
LB: loop body
LE: loop exit
PB: predicated region body
PF: predicated region fallthrough
CT: control target
= control target key end

     0   :  { %vm380_vm0 = vcmask 1043456   ;;  %vm104_vm1 = vcmask 64512   ;;  %vm2203_vm2 = vcmask 130048   ;;  %s3466_s2 = inlined_call_operand.vmem [shape: bf16[9,8,16], index: 2, kind: input, shape index: {}]   ;;  %s3467_s0 = inlined_call_operand.vmem [shape: bf16[512,8], index: 0, kind: input, shape index: {}]   ;;  %s3468_s1 = inlined_call_operand.vmem [shape: bf16[512,8], index: 1, kind: input, shape index: {}]   ;;  %s3469_s3 = inlined_call_operand.vmem [shape: f32[1,16], index: 3, kind: input, shape index: {}]   ;;  %s3470_s4 = inlined_call_operand.vmem [shape: f32[256,16], index: 4, kind: output, shape index: {}]  }
   0x1   :  { %v2278_v0 = vld [vmem:[%s3466_s2 + $0x4] sm:$0xf]  ;;  %v2627_v2 = vld [vmem:[%s3467_s0 + $0x28] sm:$0xff]   ;;  %v281_v18 = vld [vmem:[%s3466_s2] sm:$0xf] }
   0x2   :  { %v2561_v1 = vld [vmem:[%s3467_s0 + $0x20] sm:$0xff]   ;;  %v382_v3 = vsel %vm380_vm0, %v2278_v0, 0  ;;  %v2452_v6 = vunpack.c.l.bf16 %v2627_v2  ;;  %v2637_v8 = vld [vmem:[%s3467_s0 + $0x48] sm:$0xff]   ;;  %v2345_v19 = vld [vmem:[%s3466_s2 + $0x10] sm:$0xf]  ;;  %v522_v22 = vsel %vm380_vm0, %v281_v18, 0  ;;  %v2453_v32 = vunpack.c.h.bf16 %v2627_v2 }
   0x3   :  { %v2448_v4 = vunpack.c.l.bf16 %v2561_v1  ;;  %v2449_v5 = vunpack.c.h.bf16 %v2561_v1  ;;  %v2565_v7 = vld [vmem:[%s3467_s0 + $0x40] sm:$0xff]   ;;  %2589 = vmatpush.bf16.msra.mxu1 %v382_v3  ;;  %2590 = vmatpush.bf16.msra.mxu2 %v382_v3  ;;  %v2311_v11 = vld [vmem:[%s3466_s2 + $0x8] sm:$0xf]  ;;  %v2328_v15 = vld [vmem:[%s3466_s2 + $0xc] sm:$0xf]  ;;  %v2468_v16 = vunpack.c.l.bf16 %v2637_v8  ;;  %v1156_v23 = vsel %vm380_vm0, %v2345_v19, 0 }
   0x4   :  { %v2464_v9 = vunpack.c.l.bf16 %v2565_v7  ;;  %v2569_v10 = vld [vmem:[%s3467_s0 + $0x60] sm:$0xff]   ;;  %2591 = vmatpush.bf16.msra.mxu3 %v382_v3  ;;  %391 = vmatpush.bf16.msra.mxu0 %v382_v3  ;;  %v2465_v12 = vunpack.c.h.bf16 %v2565_v7  ;;  %v2570_v13 = vld [vmem:[%s3467_s0 + $0x68] sm:$0xff]   ;;  %v712_v14 = vsel %vm380_vm0, %v2311_v11, 0  ;;  %v934_v17 = vsel %vm380_vm0, %v2328_v15, 0  ;;  %115 = vst.msk [vmem:[#allocation2 + $0x50] sm:$0xff] %vm104_vm1, %v2452_v6  ;;  %v2563_v29 = vld [vmem:[%s3467_s0 + $0x30] sm:$0xff]  }
   0x5   :  { %113 = vst.msk [vmem:[#allocation2 + $0x40] sm:$0xff] %vm104_vm1, %v2448_v4  ;;  %v2480_v20 = vunpack.c.l.bf16 %v2569_v10  ;;  %v2431_v21 = vld [vmem:[%s3467_s0] sm:$0xff]   ;;  %v2481_v24 = vunpack.c.h.bf16 %v2569_v10  ;;  %v2484_v25 = vunpack.c.l.bf16 %v2570_v13  ;;  %v2558_v26 = vld [vmem:[%s3467_s0 + $0x8] sm:$0xff]   ;;  %v2567_v33 = vld [vmem:[%s3467_s0 + $0x50] sm:$0xff]   ;;  %v2456_v35 = vunpack.c.l.bf16 %v2563_v29 }
   0x6   :  { %114 = vst.msk [vmem:[#allocation2 + $0x48] sm:$0xff] %vm104_vm1, %v2449_v5  ;;  %v2432_v27 = vunpack.c.l.bf16 %v2431_v21  ;;  %v2433_v28 = vunpack.c.h.bf16 %v2431_v21  ;;  %v2436_v30 = vunpack.c.l.bf16 %v2558_v26  ;;  %v2469_v37 = vunpack.c.h.bf16 %v2637_v8  ;;  %v2571_v38 = vld [vmem:[%s3467_s0 + $0x70] sm:$0xff]   ;;  %v2564_v48 = vld [vmem:[%s3467_s0 + $0x38] sm:$0xff]   ;;  %v2573_v8 = vld [vmem:[%s3468_s1 + $0x80] sm:$0xff]  }
   0x7   :  { %721 = vmatpush.bf16.msrb.mxu2 %v712_v14  ;;  %121 = vst.msk [vmem:[#allocation2 + $0x80] sm:$0xff] %vm104_vm1, %v2464_v9  ;;  %531 = vmatpush.bf16.msrb.mxu1 %v522_v22  ;;  %v2472_v40 = vunpack.c.l.bf16 %v2567_v33  ;;  %v2485_v42 = vunpack.c.h.bf16 %v2570_v13  ;;  %v2559_v43 = vld [vmem:[%s3467_s0 + $0x10] sm:$0xff]   ;;  %v2488_v45 = vunpack.c.l.bf16 %v2571_v38  ;;  %v2437_v47 = vunpack.c.h.bf16 %v2558_v26  ;;  %v2568_v53 = vld [vmem:[%s3467_s0 + $0x58] sm:$0xff]  }
   0x8   :  { %943 = vmatpush.bf16.msrb.mxu3 %v934_v17  ;;  %1165 = vmatpush.bf16.msrb.mxu0 %v1156_v23  ;;  %122 = vst.msk [vmem:[#allocation2 + $0x88] sm:$0xff] %vm104_vm1, %v2465_v12  ;;  %v2440_v50 = vunpack.c.l.bf16 %v2559_v43  ;;  %v2457_v52 = vunpack.c.h.bf16 %v2563_v29  ;;  %v2460_v55 = vunpack.c.l.bf16 %v2564_v48  ;;  %v2473_v57 = vunpack.c.h.bf16 %v2567_v33  ;;  %v2572_v58 = vld [vmem:[%s3467_s0 + $0x78] sm:$0xff]  }
   0x9   :  { %123 = vst.msk [vmem:[#allocation2 + $0x90] sm:$0xff] %vm104_vm1, %v2468_v16  ;;  %v2476_v60 = vunpack.c.l.bf16 %v2568_v53  ;;  %v2489_v61 = vunpack.c.h.bf16 %v2571_v38  ;;  %v2560_v62 = vld [vmem:[%s3467_s0 + $0x18] sm:$0xff]   ;;  %v2492_v1 = vunpack.c.l.bf16 %v2572_v58  ;;  %v2441_v2 = vunpack.c.h.bf16 %v2559_v43 }
   0xa   :  { %129 = vst.msk [vmem:[#allocation2 + $0xc0] sm:$0xff] %vm104_vm1, %v2480_v20  ;;  %v2444_v3 = vunpack.c.l.bf16 %v2560_v62  ;;  %v2461_v7 = vunpack.c.h.bf16 %v2564_v48  ;;  %v2477_v9 = vunpack.c.h.bf16 %v2568_v53  ;;  %v2493_v10 = vunpack.c.h.bf16 %v2572_v58  ;;  %v2379_v33 = vld [vmem:[%s3466_s2 + $0x18] sm:$0xf]  ;;  %v2396_v38 = vld [vmem:[%s3466_s2 + $0x1c] sm:$0xf] }
   0xb   :  { %130 = vst.msk [vmem:[#allocation2 + $0xc8] sm:$0xff] %vm104_vm1, %v2481_v24  ;;  %v2496_v14 = vunpack.c.l.bf16 %v2573_v8  ;;  %v2445_v15 = vunpack.c.h.bf16 %v2560_v62  ;;  %v2497_v19 = vunpack.c.h.bf16 %v2573_v8 }
   0xc   :  { %131 = vst.msk [vmem:[#allocation2 + $0xd0] sm:$0xff] %vm104_vm1, %v2484_v25 }
   0xd   :  { %v290_v31 = vld [vmem:[#allocation2 + $0x41] sm:$0xff]  ;;  %v291_v34 = vld [vmem:[#allocation2 + $0x49] sm:$0xff]  ;;  %105 = vst.msk [vmem:[#allocation2] sm:$0xff] %vm104_vm1, %v2432_v27 }
   0xe   :  { %v2685_v36 = vpack.c.bf16 %v291_v34, %v290_v31  ;;  %106 = vst.msk [vmem:[#allocation2 + $0x8] sm:$0xff] %vm104_vm1, %v2433_v28  ;;  %v1600_v34 = vsel %vm380_vm0, %v2379_v33, 0 }
   0xf   :  { %v298_v39 = vld [vmem:[#allocation2 + $0x81] sm:$0xff]  ;;  %107 = vst.msk [vmem:[#allocation2 + $0x10] sm:$0xff] %vm104_vm1, %v2436_v30 }
  0x10   :  { %2283 = vmatmul.msk.bf16.vlgmr.msra.gmra.mxu1 %vm104_vm1, %v2685_v36  ;;  %v299_v41 = vld [vmem:[#allocation2 + $0x89] sm:$0xff]  ;;  %116 = vst.msk [vmem:[#allocation2 + $0x58] sm:$0xff] %vm104_vm1, %v2453_v32 }
  0x11   :  { %v2699_v44 = vpack.c.bf16 %v299_v41, %v298_v39  ;;  %117 = vst.msk [vmem:[#allocation2 + $0x60] sm:$0xff] %vm104_vm1, %v2456_v35  ;;  %v2362_v39 = vld [vmem:[%s3466_s2 + $0x14] sm:$0xf] }
  0x12   :  { %v306_v46 = vld [vmem:[#allocation2 + $0xc1] sm:$0xff]  ;;  %124 = vst.msk [vmem:[#allocation2 + $0x98] sm:$0xff] %vm104_vm1, %v2469_v37  ;;  %v1378_v41 = vsel %vm380_vm0, %v2362_v39, 0 }
  0x13   :  { %2287 = vmatmul.msk.bf16.vlgmr.msra.gmra.mxu2 %vm104_vm1, %v2699_v44  ;;  %v307_v49 = vld [vmem:[#allocation2 + $0xc9] sm:$0xff]  ;;  %125 = vst.msk [vmem:[#allocation2 + $0xa0] sm:$0xff] %vm104_vm1, %v2472_v40  ;;  %v1822_v40 = vsel %vm380_vm0, %v2396_v38, 0  ;;  %1387 = vmatpush.bf16.msra.mxu1 %v1378_v41 }
  0x14   :  { %v2709_v51 = vpack.c.bf16 %v307_v49, %v306_v46  ;;  %132 = vst.msk [vmem:[#allocation2 + $0xd8] sm:$0xff] %vm104_vm1, %v2485_v42  ;;  %1609 = vmatpush.bf16.msra.mxu2 %v1600_v34  ;;  %v2413_v42 = vld [vmem:[%s3466_s2 + $0x20] sm:$0xf] }
  0x15   :  { %v282_v54 = vld [vmem:[#allocation2 + $0x1] sm:$0xff]  ;;  %133 = vst.msk [vmem:[#allocation2 + $0xe0] sm:$0xff] %vm104_vm1, %v2488_v45  ;;  %v2044_v43 = vsel %vm380_vm0, %v2413_v42, 0 }
  0x16   :  { %2291 = vmatmul.msk.bf16.vlgmr.msra.gmra.mxu3 %vm104_vm1, %v2709_v51  ;;  %v283_v56 = vld [vmem:[#allocation2 + $0x9] sm:$0xff]  ;;  %108 = vst.msk [vmem:[#allocation2 + $0x18] sm:$0xff] %vm104_vm1, %v2437_v47 }
  0x17   :  { %v314_v59 = vpack.c.bf16 %v283_v56, %v282_v54  ;;  %109 = vst.msk [vmem:[#allocation2 + $0x20] sm:$0xff] %vm104_vm1, %v2440_v50  ;;  %v292_v63 = vld [vmem:[#allocation2 + $0x51] sm:$0xff]  ;;  %1831 = vmatpush.bf16.msra.mxu3 %v1822_v40  ;;  %v233_v56 = vld [vmem:[#allocation2] sm:$0xff] }
  0x18   :  { %118 = vst.msk [vmem:[#allocation2 + $0x68] sm:$0xff] %vm104_vm1, %v2457_v52  ;;  %v293_v0 = vld [vmem:[#allocation2 + $0x59] sm:$0xff]  ;;  %v835_v62 = vld [vmem:[#allocation2 + $0x10] sm:$0xff] }
  0x19   :  { %2279 = vmatmul.msk.bf16.vlgmr.msra.gmra.mxu0 %vm104_vm1, %v314_v59  ;;  %119 = vst.msk [vmem:[#allocation2 + $0x70] sm:$0xff] %vm104_vm1, %v2460_v55  ;;  %v2731_v4 = vpack.c.bf16 %v293_v0, %v292_v63  ;;  %v300_v5 = vld [vmem:[#allocation2 + $0x91] sm:$0xff]  ;;  %v613_v59 = vld [vmem:[#allocation2 + $0x2] sm:$0xff] }
  0x1a   :  { %126 = vst.msk [vmem:[#allocation2 + $0xa8] sm:$0xff] %vm104_vm1, %v2473_v57  ;;  %v301_v6 = vld [vmem:[#allocation2 + $0x99] sm:$0xff]  ;;  %2053 = vmatpush.bf16.msra.mxu0 %v2044_v43  ;;  %v234_v57 = vld [vmem:[#allocation2 + $0x8] sm:$0xff] }
  0x1b   :  { %127 = vst.msk [vmem:[#allocation2 + $0xb0] sm:$0xff] %vm104_vm1, %v2476_v60  ;;  %v2739_v11 = vpack.c.bf16 %v301_v6, %v300_v5  ;;  %v308_v12 = vld [vmem:[#allocation2 + $0xd1] sm:$0xff]  ;;  %v265_v58 = vpack.c.bf16 %v234_v57, %v233_v56  ;;  %v845_v42 = vld [vmem:[#allocation2 + $0x60] sm:$0xff] }
  0x1c   :  { %134 = vst.msk [vmem:[#allocation2 + $0xe8] sm:$0xff] %vm104_vm1, %v2489_v61  ;;  %v309_v13 = vld [vmem:[#allocation2 + $0xd9] sm:$0xff]  ;;  %v614_v60 = vld [vmem:[#allocation2 + $0xa] sm:$0xff] }
  0x1d   :  { %135 = vst.msk [vmem:[#allocation2 + $0xf0] sm:$0xff] %vm104_vm1, %v2492_v1  ;;  %v2746_v16 = vpack.c.bf16 %v309_v13, %v308_v12  ;;  %v284_v17 = vld [vmem:[#allocation2 + $0x11] sm:$0xff]  ;;  %v645_v61 = vpack.c.bf16 %v614_v60, %v613_v59 }
  0x1e   :  { %110 = vst.msk [vmem:[#allocation2 + $0x28] sm:$0xff] %vm104_vm1, %v2441_v2  ;;  %v285_v18 = vld [vmem:[#allocation2 + $0x19] sm:$0xff] }
  0x1f   :  { %111 = vst.msk [vmem:[#allocation2 + $0x30] sm:$0xff] %vm104_vm1, %v2444_v3  ;;  %v315_v20 = vpack.c.bf16 %v285_v18, %v284_v17  ;;  %v294_v21 = vld [vmem:[#allocation2 + $0x61] sm:$0xff]  ;;  %v836_v63 = vld [vmem:[#allocation2 + $0x18] sm:$0xff] }
  0x20   :  { %2284 = vmatmul.msk.bf16.gmra.mxu1 %vm104_vm1, %v2731_v4  ;;  %120 = vst.msk [vmem:[#allocation2 + $0x78] sm:$0xff] %vm104_vm1, %v2461_v7  ;;  %v295_v22 = vld [vmem:[#allocation2 + $0x69] sm:$0xff]  ;;  %v867_v0 = vpack.c.bf16 %v836_v63, %v835_v62  ;;  %v615_v1 = vld [vmem:[#allocation2 + $0x12] sm:$0xff]  ;;  %v616_v2 = vld [vmem:[#allocation2 + $0x1a] sm:$0xff] }
  0x21   :  { %128 = vst.msk [vmem:[#allocation2 + $0xb8] sm:$0xff] %vm104_vm1, %v2477_v9  ;;  %v2757_v23 = vpack.c.bf16 %v295_v22, %v294_v21  ;;  %v302_v24 = vld [vmem:[#allocation2 + $0xa1] sm:$0xff]  ;;  %v2806_v3 = vpack.c.bf16 %v616_v2, %v615_v1  ;;  %v626_v56 = vld [vmem:[#allocation2 + $0x6a] sm:$0xff] }
  0x22   :  { %136 = vst.msk [vmem:[#allocation2 + $0xf8] sm:$0xff] %vm104_vm1, %v2493_v10  ;;  %v303_v25 = vld [vmem:[#allocation2 + $0xa9] sm:$0xff]  ;;  %v837_v5 = vld [vmem:[#allocation2 + $0x20] sm:$0xff] }
  0x23   :  { %2288 = vmatmul.msk.bf16.gmra.mxu2 %vm104_vm1, %v2739_v11  ;;  %201 = vst.msk [vmem:[#allocation2 + $0x100] sm:$0xff] %vm104_vm1, %v2496_v14  ;;  %v2759_v26 = vpack.c.bf16 %v303_v25, %v302_v24  ;;  %v310_v27 = vld [vmem:[#allocation2 + $0xe1] sm:$0xff]  ;;  %v622_v24 = vld [vmem:[#allocation2 + $0x4a] sm:$0xff] }
  0x24   :  { %112 = vst.msk [vmem:[#allocation2 + $0x38] sm:$0xff] %vm104_vm1, %v2445_v15  ;;  %v311_v28 = vld [vmem:[#allocation2 + $0xe9] sm:$0xff] }
  0x25   :  { %202 = vst.msk [vmem:[#allocation2 + $0x108] sm:$0xff] %vm104_vm1, %v2497_v19  ;;  %v2763_v29 = vpack.c.bf16 %v311_v28, %v310_v27  ;;  %v286_v30 = vld [vmem:[#allocation2 + $0x21] sm:$0xff]  ;;  %v843_v28 = vld [vmem:[#allocation2 + $0x50] sm:$0xff] }
  0x26   :  { %2292 = vmatmul.msk.bf16.gmra.mxu3 %vm104_vm1, %v2746_v16  ;;  %v287_v31 = vld [vmem:[#allocation2 + $0x29] sm:$0xff]  ;;  %v841_v19 = vld [vmem:[#allocation2 + $0x40] sm:$0xff] }
  0x27   :  { %v316_v32 = vpack.c.bf16 %v287_v31, %v286_v30  ;;  %v296_v35 = vld [vmem:[#allocation2 + $0x71] sm:$0xff]  ;;  %v297_v37 = vld [vmem:[#allocation2 + $0x79] sm:$0xff]  ;;  %v838_v6 = vld [vmem:[#allocation2 + $0x28] sm:$0xff] }
  0x28   :  { %v2786_v45 = vpack.c.bf16 %v297_v37, %v296_v35  ;;  %v304_v46 = vld [vmem:[#allocation2 + $0xb1] sm:$0xff]  ;;  %v305_v47 = vld [vmem:[#allocation2 + $0xb9] sm:$0xff]  ;;  %v2809_v7 = vpack.c.bf16 %v838_v6, %v837_v5  ;;  %v617_v8 = vld [vmem:[#allocation2 + $0x22] sm:$0xff] }
  0x29   :  { %2280 = vmatmul.msk.bf16.gmra.mxu0 %vm104_vm1, %v315_v20  ;;  %v2788_v48 = vpack.c.bf16 %v305_v47, %v304_v46  ;;  %v312_v49 = vld [vmem:[#allocation2 + $0xf1] sm:$0xff]  ;;  %v621_v22 = vld [vmem:[#allocation2 + $0x42] sm:$0xff]  ;;  %v624_v37 = vld [vmem:[#allocation2 + $0x5a] sm:$0xff] }
  0x2a   :  { %v313_v50 = vld [vmem:[#allocation2 + $0xf9] sm:$0xff]  ;;  %v618_v9 = vld [vmem:[#allocation2 + $0x2a] sm:$0xff]  ;;  %v2842_v27 = vpack.c.bf16 %v622_v24, %v621_v22 }
  0x2b   :  { %v2792_v52 = vpack.c.bf16 %v313_v50, %v312_v49  ;;  %v288_v53 = vld [vmem:[#allocation2 + $0x31] sm:$0xff]  ;;  %v289_v54 = vld [vmem:[#allocation2 + $0x39] sm:$0xff]  ;;  %v2816_v10 = vpack.c.bf16 %v618_v9, %v617_v8  ;;  %v846_v43 = vld [vmem:[#allocation2 + $0x68] sm:$0xff] }
  0x2c   :  { %v2796_v55 = vpack.c.bf16 %v289_v54, %v288_v53  ;;  %v839_v12 = vld [vmem:[#allocation2 + $0x30] sm:$0xff]  ;;  %v840_v13 = vld [vmem:[#allocation2 + $0x38] sm:$0xff]  ;;  %v625_v54 = vld [vmem:[#allocation2 + $0x62] sm:$0xff] }
  0x2d   :  { %v2820_v14 = vpack.c.bf16 %v840_v13, %v839_v12  ;;  %v619_v15 = vld [vmem:[#allocation2 + $0x32] sm:$0xff]  ;;  %v620_v17 = vld [vmem:[#allocation2 + $0x3a] sm:$0xff]  ;;  %v2896_v60 = vpack.c.bf16 %v626_v56, %v625_v54 }
  0x2e   :  { %v2828_v18 = vpack.c.bf16 %v620_v17, %v619_v15  ;;  %v844_v30 = vld [vmem:[#allocation2 + $0x58] sm:$0xff]  ;;  %v849_v17 = vld [vmem:[#allocation2 + $0x80] sm:$0xff] }
  0x2f   :  { %v2846_v31 = vpack.c.bf16 %v844_v30, %v843_v28  ;;  %v623_v35 = vld [vmem:[#allocation2 + $0x52] sm:$0xff]  ;;  %v628_v8 = vld [vmem:[#allocation2 + $0x7a] sm:$0xff] }
  0x30   :  { %2285 = vmatmul.msk.bf16.gmra.mxu1 %vm104_vm1, %v2757_v23  ;;  %v2868_v41 = vpack.c.bf16 %v624_v37, %v623_v35  ;;  %v848_v62 = vld [vmem:[#allocation2 + $0x78] sm:$0xff]  ;;  %v629_v35 = vld [vmem:[#allocation2 + $0x82] sm:$0xff]  ;;  %v630_v37 = vld [vmem:[#allocation2 + $0x8a] sm:$0xff] }
  0x31   :  { %v627_v6 = vld [vmem:[#allocation2 + $0x72] sm:$0xff] }
  0x32   :  { %v2924_v15 = vpack.c.bf16 %v628_v8, %v627_v6  ;;  %v852_v6 = vld [vmem:[#allocation2 + $0x98] sm:$0xff] }
  0x33   :  { %2289 = vmatmul.msk.bf16.gmra.mxu2 %vm104_vm1, %v2759_v26 }
  0x34   :  { %3480 = vst [vmem:[#allocation6_spill] sm:$0xff] %v2924_v15 }
  0x36   :  { %2293 = vmatmul.msk.bf16.gmra.mxu3 %vm104_vm1, %v2763_v29 }
  0x39   :  { %2281 = vmatmul.msk.bf16.gmra.mxu0 %vm104_vm1, %v316_v32 }
  0x40   :  { %2286 = vmatmul.msk.bf16.gmra.mxu1 %vm104_vm1, %v2786_v45 }
  0x43   :  { %2290 = vmatmul.msk.bf16.gmra.mxu2 %vm104_vm1, %v2788_v48 }
  0x46   :  { %2294 = vmatmul.msk.bf16.gmra.mxu3 %vm104_vm1, %v2792_v52 }
  0x49   :  { %2282 = vmatmul.msk.bf16.gmra.mxu0 %vm104_vm1, %v2796_v55 }
  0x50   :  { %2295 = vmatmul.msk.bf16.vlgmr.msrb.gmra.mxu1 %vm104_vm1, %v265_v58 }
  0x53   :  { %2312 = vmatmul.msk.bf16.vlgmr.msrb.gmra.mxu2 %vm104_vm1, %v645_v61  ;;  %v847_v61 = vld [vmem:[#allocation2 + $0x70] sm:$0xff] }
  0x56   :  { %2329 = vmatmul.msk.bf16.vlgmr.msrb.gmra.mxu3 %vm104_vm1, %v867_v0 }
  0x59   :  { %2346 = vmatmul.msk.bf16.vlgmr.msrb.gmra.mxu0 %vm104_vm1, %v315_v20  ;;  %v842_v20 = vld [vmem:[#allocation2 + $0x48] sm:$0xff] }
  0x5a   :  { %v2832_v21 = vpack.c.bf16 %v842_v20, %v841_v19  ;;  %v850_v19 = vld [vmem:[#allocation2 + $0x88] sm:$0xff] }
  0x60   :  { %2296 = vmatmul.msk.bf16.gmra.mxu1 %vm104_vm1, %v867_v0 }
  0x63   :  { %2313 = vmatmul.msk.bf16.gmra.mxu2 %vm104_vm1, %v2806_v3 }
  0x66   :  { %2330 = vmatmul.msk.bf16.gmra.mxu3 %vm104_vm1, %v2809_v7 }
  0x69   :  { %2347 = vmatmul.msk.bf16.gmra.mxu0 %vm104_vm1, %v316_v32 }
  0x70   :  { %2297 = vmatmul.msk.bf16.gmra.mxu1 %vm104_vm1, %v2809_v7 }
  0x73   :  { %2314 = vmatmul.msk.bf16.gmra.mxu2 %vm104_vm1, %v2816_v10 }
  0x76   :  { %2331 = vmatmul.msk.bf16.gmra.mxu3 %vm104_vm1, %v2820_v14 }
  0x79   :  { %2348 = vmatmul.msk.bf16.gmra.mxu0 %vm104_vm1, %v2796_v55 }
  0x80   :  { %2298 = vmatmul.msk.bf16.gmra.mxu1 %vm104_vm1, %v2820_v14 }
  0x83   :  { %2315 = vmatmul.msk.bf16.gmra.mxu2 %vm104_vm1, %v2828_v18 }
  0x86   :  { %2332 = vmatmul.msk.bf16.gmra.mxu3 %vm104_vm1, %v2832_v21 }
  0x89   :  { %2349 = vmatmul.msk.bf16.gmra.mxu0 %vm104_vm1, %v2685_v36 }
  0x8d   :  { %v2840_v25 = vpop.f32.mrf.mxu1 }
  0x90   :  { %2299 = vmatmul.msk.bf16.gmra.mxu1 %vm104_vm1, %v2832_v21 }
  0x93   :  { %2316 = vmatmul.msk.bf16.gmra.mxu2 %vm104_vm1, %v2842_v27 }
  0x95   :  { %v2850_v32 = vpop.f32.mrf.mxu1 }
  0x96   :  { %v2852_v33 = vpop.f32.mrf.mxu0  ;;  %2333 = vmatmul.msk.bf16.gmra.mxu3 %vm104_vm1, %v2846_v31  ;;  %v2856_v36 = vpop.f32.mrf.mxu2 }
  0x99   :  { %2350 = vmatmul.msk.bf16.gmra.mxu0 %vm104_vm1, %v2731_v4  ;;  %v2860_v34 = vpop.f32.mrf.mxu3  ;;  %v2874_v4 = vpack.c.bf16 %v846_v43, %v845_v42 }
  0x9d   :  { %v2862_v38 = vpop.f32.mrf.mxu1 }
  0x9e   :  { %v2864_v39 = vpop.f32.mrf.mxu0  ;;  %v2866_v40 = vpop.f32.mrf.mxu2 }
  0xa0   :  { %2300 = vmatmul.msk.bf16.gmra.mxu1 %vm104_vm1, %v2846_v31 }
  0xa1   :  { %v2872_v46 = vpop.f32.mrf.mxu3 }
  0xa3   :  { %2317 = vmatmul.msk.bf16.gmra.mxu2 %vm104_vm1, %v2868_v41 }
  0xa5   :  { %v2878_v47 = vpop.f32.mrf.mxu1 }
  0xa6   :  { %v2880_v49 = vpop.f32.mrf.mxu0  ;;  %2334 = vmatmul.msk.bf16.gmra.mxu3 %vm104_vm1, %v2874_v4  ;;  %v2884_v50 = vpop.f32.mrf.mxu2 }
  0xa9   :  { %2351 = vmatmul.msk.bf16.gmra.mxu0 %vm104_vm1, %v2757_v23  ;;  %v2888_v53 = vpop.f32.mrf.mxu3  ;;  %v2902_v23 = vpack.c.bf16 %v848_v62, %v847_v61  ;;  %v2951_v61 = vpack.c.bf16 %v630_v37, %v629_v35  ;;  %v851_v62 = vld [vmem:[#allocation2 + $0x90] sm:$0xff] }
  0xaa   :  { %3477 = vst [vmem:[#allocation3_spill] sm:$0xff] %v2888_v53  ;;  %v853_v53 = vld [vmem:[#allocation2 + $0xa0] sm:$0xff] }
  0xab   :  { %3484 = vst [vmem:[#allocation10_spill] sm:$0xff] %v2951_v61 }
  0xad   :  { %v2890_v57 = vpop.f32.mrf.mxu1 }
  0xae   :  { %v2892_v58 = vpop.f32.mrf.mxu0  ;;  %v2894_v59 = vpop.f32.mrf.mxu2 }
  0xb0   :  { %2301 = vmatmul.msk.bf16.gmra.mxu1 %vm104_vm1, %v2874_v4 }
  0xb1   :  { %v2900_v63 = vpop.f32.mrf.mxu3 }
  0xb2   :  { %3478 = vst [vmem:[#allocation4_spill] sm:$0xff] %v2900_v63 }
  0xb3   :  { %2318 = vmatmul.msk.bf16.gmra.mxu2 %vm104_vm1, %v2896_v60 }
  0xb5   :  { %v2906_v0 = vpop.f32.mrf.mxu1 }
  0xb6   :  { %v2908_v1 = vpop.f32.mrf.mxu0  ;;  %2335 = vmatmul.msk.bf16.gmra.mxu3 %vm104_vm1, %v2902_v23  ;;  %v2912_v2 = vpop.f32.mrf.mxu2 }
  0xb9   :  { %2352 = vmatmul.msk.bf16.gmra.mxu0 %vm104_vm1, %v2786_v45  ;;  %v2916_v5 = vpop.f32.mrf.mxu3  ;;  %v2930_v45 = vpack.c.bf16 %v850_v19, %v849_v17 }
  0xba   :  { %3479 = vst [vmem:[#allocation5_spill] sm:$0xff] %v2916_v5 }
  0xbb   :  { %3482 = vst [vmem:[#allocation8_spill] sm:$0xff] %v2930_v45 }
  0xbd   :  { %v2918_v9 = vpop.f32.mrf.mxu1 }
  0xbe   :  { %v2920_v12 = vpop.f32.mrf.mxu0  ;;  %v2922_v13 = vpop.f32.mrf.mxu2 }
  0xc0   :  { %2302 = vmatmul.msk.bf16.gmra.mxu1 %vm104_vm1, %v2902_v23 }
  0xc1   :  { %v2928_v20 = vpop.f32.mrf.mxu3 }
  0xc2   :  { %3481 = vst [vmem:[#allocation7_spill] sm:$0xff] %v2928_v20 }
  0xc3   :  { %2319 = vmatmul.msk.bf16.gmra.mxu2 %vm104_vm1, %v2924_v15 }
  0xc5   :  { %v2934_v22 = vpop.f32.mrf.mxu1 }
  0xc6   :  { %v2936_v24 = vpop.f32.mrf.mxu0  ;;  %2336 = vmatmul.msk.bf16.gmra.mxu3 %vm104_vm1, %v2930_v45  ;;  %v2940_v28 = vpop.f32.mrf.mxu2 }
  0xc9   :  { %2353 = vmatmul.msk.bf16.gmra.mxu0 %vm104_vm1, %v2699_v44  ;;  %v2944_v30 = vpop.f32.mrf.mxu3  ;;  %v2957_v44 = vpack.c.bf16 %v852_v6, %v851_v62  ;;  %v632_v62 = vld [vmem:[#allocation2 + $0x9a] sm:$0xff] }
  0xca   :  { %3483 = vst [vmem:[#allocation9_spill] sm:$0xff] %v2944_v30 }
  0xcd   :  { %v533_v42 = vpop.f32.mrf.mxu1 }
  0xce   :  { %v2946_v43 = vpop.f32.mrf.mxu0  ;;  %v2948_v54 = vpop.f32.mrf.mxu2  ;;  %v534_v56 = vadd.f32 %v533_v42, %v2852_v33 }
  0xd0   :  { %2303 = vmatmul.msk.bf16.gmra.mxu1 %vm104_vm1, %v2930_v45 }
  0xd1   :  { %v2955_v8 = vpop.f32.mrf.mxu3 }
  0xd2   :  { %3485 = vst [vmem:[#allocation11_spill] sm:$0xff] %v2955_v8  ;;  %v631_v8 = vld [vmem:[#allocation2 + $0x92] sm:$0xff] }
  0xd3   :  { %2320 = vmatmul.msk.bf16.gmra.mxu2 %vm104_vm1, %v2951_v61  ;;  %v2969_v15 = vpack.c.bf16 %v632_v62, %v631_v8  ;;  %v633_v8 = vld [vmem:[#allocation2 + $0xa2] sm:$0xff] }
  0xd5   :  { %v535_v17 = vpop.f32.mrf.mxu1 }
  0xd6   :  { %v1167_v19 = vpop.f32.mrf.mxu0  ;;  %2337 = vmatmul.msk.bf16.gmra.mxu3 %vm104_vm1, %v2957_v44  ;;  %v723_v33 = vpop.f32.mrf.mxu2  ;;  %v536_v35 = vadd.f32 %v535_v17, %v2864_v39  ;;  %v854_v39 = vld [vmem:[#allocation2 + $0xa8] sm:$0xff] }
  0xd7   :  { %v803_v37 = vadd.f32 %v723_v33, %v534_v56  ;;  %v2973_v17 = vpack.c.bf16 %v854_v39, %v853_v53 }
  0xd9   :  { %2354 = vmatmul.msk.bf16.gmra.mxu0 %vm104_vm1, %v2739_v11  ;;  %v945_v42 = vpop.f32.mrf.mxu3 }
  0xda   :  { %v1025_v30 = vadd.f32 %v945_v42, %v803_v37 }
  0xdc   :  { %v2966_v6 = vadd.f32 %v1167_v19, %v1025_v30 }
  0xdd   :  { %v538_v20 = vpop.f32.mrf.mxu1 }
  0xde   :  { %v1169_v61 = vpop.f32.mrf.mxu0  ;;  %v725_v5 = vpop.f32.mrf.mxu2  ;;  %v539_v45 = vadd.f32 %v538_v20, %v2880_v49 }
  0xdf   :  { %v804_v63 = vadd.f32 %v725_v5, %v536_v35  ;;  %v634_v35 = vld [vmem:[#allocation2 + $0xaa] sm:$0xff] }
  0xe0   :  { %2304 = vmatmul.msk.bf16.gmra.mxu1 %vm104_vm1, %v2957_v44 }
  0xe1   :  { %v947_v11 = vpop.f32.mrf.mxu3 }
  0xe2   :  { %v1026_v56 = vadd.f32 %v947_v11, %v804_v63 }
  0xe3   :  { %2321 = vmatmul.msk.bf16.gmra.mxu2 %vm104_vm1, %v2969_v15 }
  0xe4   :  { %v2977_v30 = vadd.f32 %v1169_v61, %v1026_v56  ;;  %v2987_v56 = vpack.c.bf16 %v634_v35, %v633_v8  ;;  %v635_v8 = vld [vmem:[#allocation2 + $0xb2] sm:$0xff]  ;;  %v636_v35 = vld [vmem:[#allocation2 + $0xba] sm:$0xff] }
  0xe5   :  { %v540_v19 = vpop.f32.mrf.mxu1 }
  0xe6   :  { %3486 = vst [vmem:[#allocation12_spill] sm:$0xff] %v2977_v30  ;;  %v1172_v33 = vpop.f32.mrf.mxu0  ;;  %2338 = vmatmul.msk.bf16.gmra.mxu3 %vm104_vm1, %v2973_v17  ;;  %v728_v49 = vpop.f32.mrf.mxu2  ;;  %v541_v5 = vadd.f32 %v540_v19, %v2892_v58  ;;  %v855_v30 = vld [vmem:[#allocation2 + $0xb0] sm:$0xff]  ;;  %v856_v58 = vld [vmem:[#allocation2 + $0xb8] sm:$0xff] }
  0xe7   :  { %v805_v20 = vadd.f32 %v728_v49, %v539_v45  ;;  %v2991_v19 = vpack.c.bf16 %v856_v58, %v855_v30 }
  0xe9   :  { %2355 = vmatmul.msk.bf16.gmra.mxu0 %vm104_vm1, %v2759_v26  ;;  %v950_v63 = vpop.f32.mrf.mxu3 }
  0xea   :  { %v1027_v53 = vadd.f32 %v950_v63, %v805_v20 }
  0xec   :  { %v2984_v37 = vadd.f32 %v1172_v33, %v1027_v53 }
  0xed   :  { %v543_v61 = vpop.f32.mrf.mxu1 }
  0xee   :  { %v1174_v42 = vpop.f32.mrf.mxu0  ;;  %v730_v62 = vpop.f32.mrf.mxu2  ;;  %v544_v39 = vadd.f32 %v543_v61, %v2908_v1 }
  0xef   :  { %v806_v11 = vadd.f32 %v730_v62, %v541_v5 }
  0xf0   :  { %2305 = vmatmul.msk.bf16.gmra.mxu1 %vm104_vm1, %v2973_v17 }
  0xf1   :  { %v952_v26 = vpop.f32.mrf.mxu3 }
  0xf2   :  { %v1028_v45 = vadd.f32 %v952_v26, %v806_v11 }
  0xf3   :  { %2322 = vmatmul.msk.bf16.gmra.mxu2 %vm104_vm1, %v2987_v56 }
  0xf4   :  { %v2995_v33 = vadd.f32 %v1174_v42, %v1028_v45  ;;  %v3005_v45 = vpack.c.bf16 %v636_v35, %v635_v8  ;;  %v637_v8 = vld [vmem:[#allocation2 + $0xc2] sm:$0xff]  ;;  %v638_v35 = vld [vmem:[#allocation2 + $0xca] sm:$0xff] }
  0xf5   :  { %v545_v49 = vpop.f32.mrf.mxu1 }
  0xf6   :  { %3487 = vst [vmem:[#allocation13_spill] sm:$0xff] %v2995_v33  ;;  %v1177_v20 = vpop.f32.mrf.mxu0  ;;  %2339 = vmatmul.msk.bf16.gmra.mxu3 %vm104_vm1, %v2991_v19  ;;  %v733_v1 = vpop.f32.mrf.mxu2  ;;  %v546_v5 = vadd.f32 %v545_v49, %v2920_v12  ;;  %v857_v33 = vld [vmem:[#allocation2 + $0xc0] sm:$0xff]  ;;  %v858_v12 = vld [vmem:[#allocation2 + $0xc8] sm:$0xff] }
  0xf7   :  { %v807_v63 = vadd.f32 %v733_v1, %v544_v39  ;;  %v3009_v49 = vpack.c.bf16 %v858_v12, %v857_v33 }
  0xf9   :  { %2356 = vmatmul.msk.bf16.gmra.mxu0 %vm104_vm1, %v2788_v48  ;;  %v955_v53 = vpop.f32.mrf.mxu3 }
  0xfa   :  { %v1029_v30 = vadd.f32 %v955_v53, %v807_v63 }
  0xfc   :  { %v3002_v61 = vadd.f32 %v1177_v20, %v1029_v30 }
  0xfd   :  { %v548_v42 = vpop.f32.mrf.mxu1 }
  0xfe   :  { %v1179_v62 = vpop.f32.mrf.mxu0  ;;  %v735_v11 = vpop.f32.mrf.mxu2  ;;  %v549_v58 = vadd.f32 %v548_v42, %v2936_v24 }
  0xff   :  { %v808_v26 = vadd.f32 %v735_v11, %v546_v5 }
 0x100   :  { %2306 = vmatmul.msk.bf16.gmra.mxu1 %vm104_vm1, %v2991_v19 }
 0x101   :  { %v957_v48 = vpop.f32.mrf.mxu3 }
 0x102   :  { %v1030_v39 = vadd.f32 %v957_v48, %v808_v26  ;;  %v3022_v48 = vpack.c.bf16 %v638_v35, %v637_v8  ;;  %v639_v8 = vld [vmem:[#allocation2 + $0xd2] sm:$0xff]  ;;  %v640_v35 = vld [vmem:[#allocation2 + $0xda] sm:$0xff] }
 0x103   :  { %2323 = vmatmul.msk.bf16.gmra.mxu2 %vm104_vm1, %v3005_v45 }
 0x104   :  { %v3013_v20 = vadd.f32 %v1179_v62, %v1030_v39  ;;  %v859_v39 = vld [vmem:[#allocation2 + $0xd0] sm:$0xff] }
 0x105   :  { %v550_v1 = vpop.f32.mrf.mxu1 }
 0x106   :  { %3488 = vst [vmem:[#allocation14_spill] sm:$0xff] %v3013_v20  ;;  %v1182_v63 = vpop.f32.mrf.mxu0  ;;  %2340 = vmatmul.msk.bf16.gmra.mxu3 %vm104_vm1, %v3009_v49  ;;  %v738_v24 = vpop.f32.mrf.mxu2  ;;  %v551_v5 = vadd.f32 %v550_v1, %v2946_v43  ;;  %v860_v20 = vld [vmem:[#allocation2 + $0xd8] sm:$0xff] }
 0x107   :  { %v809_v53 = vadd.f32 %v738_v24, %v549_v58 }
 0x109   :  { %2357 = vmatmul.msk.bf16.gmra.mxu0 %vm104_vm1, %v2709_v51  ;;  %v960_v30 = vpop.f32.mrf.mxu3  ;;  %v3026_v51 = vpack.c.bf16 %v860_v20, %v859_v39 }
 0x10a   :  { %v1031_v33 = vadd.f32 %v960_v30, %v809_v53 }
 0x10c   :  { %v3020_v42 = vadd.f32 %v1182_v63, %v1031_v33 }
 0x10d   :  { %v553_v62 = vpop.f32.mrf.mxu1 }
 0x10e   :  { %v1184_v11 = vpop.f32.mrf.mxu0  ;;  %v740_v26 = vpop.f32.mrf.mxu2  ;;  %v554_v63 = vadd.f32 %v553_v62, %v2840_v25 }
 0x10f   :  { %v810_v12 = vadd.f32 %v740_v26, %v551_v5 }
 0x110   :  { %2307 = vmatmul.msk.bf16.gmra.mxu1 %vm104_vm1, %v3009_v49 }
 0x111   :  { %v962_v43 = vpop.f32.mrf.mxu3 }
 0x112   :  { %v1032_v58 = vadd.f32 %v962_v43, %v810_v12 }
 0x113   :  { %2324 = vmatmul.msk.bf16.gmra.mxu2 %vm104_vm1, %v3022_v48 }
 0x114   :  { %v3030_v1 = vadd.f32 %v1184_v11, %v1032_v58  ;;  %v3040_v11 = vld [vmem:[%s3468_s1 + $0x88] sm:$0xff]  }
 0x115   :  { %v555_v24 = vpop.f32.mrf.mxu1  ;;  %3489 = vst [vmem:[#allocation15_spill] sm:$0xff] %v3040_v11  ;;  %v2500_v12 = vunpack.c.l.bf16 %v3040_v11  ;;  %v863_v11 = vld [vmem:[#allocation2 + $0xf0] sm:$0xff] }
 0x116   :  { %v1187_v5 = vpop.f32.mrf.mxu0  ;;  %2341 = vmatmul.msk.bf16.gmra.mxu3 %vm104_vm1, %v3026_v51  ;;  %v743_v53 = vpop.f32.mrf.mxu2  ;;  %v556_v62 = vadd.f32 %v555_v24, %v2850_v32 }
 0x117   :  { %v811_v30 = vadd.f32 %v743_v53, %v554_v63  ;;  %v861_v63 = vld [vmem:[#allocation2 + $0xe0] sm:$0xff]  ;;  %v862_v53 = vld [vmem:[#allocation2 + $0xe8] sm:$0xff]  ;;  %203 = vst.msk [vmem:[#allocation2 + $0x110] sm:$0xff] %vm104_vm1, %v2500_v12 }
 0x119   :  { %2358 = vmatmul.msk.bf16.gmra.mxu0 %vm104_vm1, %v2746_v16  ;;  %v965_v33 = vpop.f32.mrf.mxu3  ;;  %v3046_v16 = vpack.c.bf16 %v640_v35, %v639_v8 }
 0x11a   :  { %v1033_v20 = vadd.f32 %v965_v33, %v811_v30  ;;  %v3051_v33 = vpack.c.bf16 %v862_v53, %v861_v63  ;;  %v642_v63 = vld [vmem:[#allocation2 + $0xea] sm:$0xff] }
 0x11c   :  { %v3042_v25 = vadd.f32 %v1187_v5, %v1033_v20 }
 0x11d   :  { %v558_v26 = vpop.f32.mrf.mxu1 }
 0x11e   :  { %3490 = vst [vmem:[#allocation16_spill] sm:$0xff] %v3042_v25  ;;  %v1189_v39 = vpop.f32.mrf.mxu0  ;;  %v745_v43 = vpop.f32.mrf.mxu2  ;;  %v559_v24 = vadd.f32 %v558_v26, %v2862_v38  ;;  %v864_v25 = vld [vmem:[#allocation2 + $0xf8] sm:$0xff] }
 0x11f   :  { %v812_v58 = vadd.f32 %v745_v43, %v556_v62 }
 0x120   :  { %2308 = vmatmul.msk.bf16.gmra.mxu1 %vm104_vm1, %v3026_v51 }
 0x121   :  { %v967_v30 = vpop.f32.mrf.mxu3 }
 0x122   :  { %v1034_v5 = vadd.f32 %v967_v30, %v812_v58  ;;  %v641_v58 = vld [vmem:[#allocation2 + $0xe2] sm:$0xff] }
 0x123   :  { %2325 = vmatmul.msk.bf16.gmra.mxu2 %vm104_vm1, %v3046_v16 }
 0x124   :  { %v3055_v32 = vadd.f32 %v1189_v39, %v1034_v5 }
 0x125   :  { %v560_v20 = vpop.f32.mrf.mxu1 }
 0x126   :  { %3491 = vst [vmem:[#allocation17_spill] sm:$0xff] %v3055_v32  ;;  %v1192_v8 = vpop.f32.mrf.mxu0  ;;  %2342 = vmatmul.msk.bf16.gmra.mxu3 %vm104_vm1, %v3051_v33  ;;  %v748_v35 = vpop.f32.mrf.mxu2  ;;  %v561_v39 = vadd.f32 %v560_v20, %v2878_v47  ;;  %v3065_v32 = vpack.c.bf16 %v642_v63, %v641_v58  ;;  %v644_v63 = vld [vmem:[#allocation2 + $0xfa] sm:$0xff] }
 0x127   :  { %v813_v62 = vadd.f32 %v748_v35, %v559_v24  ;;  %v3069_v35 = vpack.c.bf16 %v864_v25, %v863_v11  ;;  %v643_v25 = vld [vmem:[#allocation2 + $0xf2] sm:$0xff] }
 0x129   :  { %2359 = vmatmul.msk.bf16.gmra.mxu0 %vm104_vm1, %v2763_v29  ;;  %v970_v12 = vpop.f32.mrf.mxu3 }
 0x12a   :  { %v1035_v43 = vadd.f32 %v970_v12, %v813_v62 }
 0x12c   :  { %v3062_v53 = vadd.f32 %v1192_v8, %v1035_v43 }
 0x12d   :  { %v563_v30 = vpop.f32.mrf.mxu1 }
 0x12e   :  { %v1194_v38 = vpop.f32.mrf.mxu0  ;;  %v750_v26 = vpop.f32.mrf.mxu2  ;;  %v564_v47 = vadd.f32 %v563_v30, %v2890_v57 }
 0x12f   :  { %v814_v5 = vadd.f32 %v750_v26, %v561_v39 }
 0x130   :  { %2309 = vmatmul.msk.bf16.gmra.mxu1 %vm104_vm1, %v3051_v33 }
 0x131   :  { %v972_v29 = vpop.f32.mrf.mxu3 }
 0x132   :  { %v1036_v24 = vadd.f32 %v972_v29, %v814_v5  ;;  %v3083_v29 = vpack.c.bf16 %v644_v63, %v643_v25 }
 0x133   :  { %2326 = vmatmul.msk.bf16.gmra.mxu2 %vm104_vm1, %v3065_v32 }
 0x134   :  { %v3073_v8 = vadd.f32 %v1194_v38, %v1036_v24  ;;  %v865_v24 = vld [vmem:[#allocation2 + $0x100] sm:$0xff] }
 0x135   :  { %v565_v20 = vpop.f32.mrf.mxu1 }
 0x136   :  { %3492 = vst [vmem:[#allocation18_spill] sm:$0xff] %v3073_v8  ;;  %v1197_v62 = vpop.f32.mrf.mxu0  ;;  %2343 = vmatmul.msk.bf16.gmra.mxu3 %vm104_vm1, %v3069_v35  ;;  %v753_v12 = vpop.f32.mrf.mxu2  ;;  %v566_v38 = vadd.f32 %v565_v20, %v2906_v0  ;;  %v866_v8 = vld [vmem:[#allocation2 + $0x108] sm:$0xff] }
 0x137   :  { %v815_v43 = vadd.f32 %v753_v12, %v564_v47  ;;  %v3087_v12 = vpack.c.bf16 %v866_v8, %v865_v24 }
 0x139   :  { %2360 = vmatmul.msk.bf16.gmra.mxu0 %vm104_vm1, %v2792_v52  ;;  %v975_v58 = vpop.f32.mrf.mxu3 }
 0x13a   :  { %v1037_v11 = vadd.f32 %v975_v58, %v815_v43  ;;  %v1087_v43 = vld [vmem:[#allocation2 + $0x101] sm:$0xff] }
 0x13c   :  { %v3080_v39 = vadd.f32 %v1197_v62, %v1037_v11  ;;  %v1088_v62 = vld [vmem:[#allocation2 + $0x109] sm:$0xff] }
 0x13d   :  { %v568_v26 = vpop.f32.mrf.mxu1  ;;  %v3094_v58 = vpack.c.bf16 %v1088_v62, %v1087_v43  ;;  %v1724_v43 = vld [vmem:[#allocation2 + $0x29] sm:$0xff] }
 0x13e   :  { %v1199_v57 = vpop.f32.mrf.mxu0  ;;  %v755_v30 = vpop.f32.mrf.mxu2  ;;  %v569_v20 = vadd.f32 %v568_v26, %v2918_v9 }
 0x13f   :  { %v816_v5 = vadd.f32 %v755_v30, %v566_v38 }
 0x140   :  { %2310 = vmatmul.msk.bf16.gmra.mxu1 %vm104_vm1, %v3069_v35 }
 0x141   :  { %v977_v52 = vpop.f32.mrf.mxu3 }
 0x142   :  { %v1038_v47 = vadd.f32 %v977_v52, %v816_v5 }
 0x143   :  { %2327 = vmatmul.msk.bf16.gmra.mxu2 %vm104_vm1, %v3083_v29 }
 0x144   :  { %v3091_v0 = vadd.f32 %v1199_v57, %v1038_v47  ;;  %v1723_v47 = vld [vmem:[#allocation2 + $0x21] sm:$0xff] }
 0x145   :  { %v570_v11 = vpop.f32.mrf.mxu1 }
 0x146   :  { %v1202_v25 = vpop.f32.mrf.mxu0  ;;  %2344 = vmatmul.msk.bf16.gmra.mxu3 %vm104_vm1, %v3087_v12  ;;  %v758_v63 = vpop.f32.mrf.mxu2  ;;  %v571_v57 = vadd.f32 %v570_v11, %v2934_v22 }
 0x147   :  { %v817_v38 = vadd.f32 %v758_v63, %v569_v20  ;;  %v1755_v63 = vpack.c.bf16 %v1724_v43, %v1723_v47 }
 0x149   :  { %2361 = vmatmul.msk.bf16.gmra.mxu0 %vm104_vm1, %v3094_v58  ;;  %v980_v8 = vpop.f32.mrf.mxu3 }
 0x14a   :  { %v1039_v30 = vadd.f32 %v980_v8, %v817_v38 }
 0x14c   :  { %v3100_v5 = vadd.f32 %v1202_v25, %v1039_v30 }
 0x14d   :  { %v573_v24 = vpop.f32.mrf.mxu1 }
 0x14e   :  { %v1204_v9 = vpop.f32.mrf.mxu0  ;;  %v760_v26 = vpop.f32.mrf.mxu2  ;;  %v574_v25 = vadd.f32 %v573_v24, %v2856_v36 }
 0x14f   :  { %v818_v52 = vadd.f32 %v760_v26, %v571_v57 }
 0x150   :  { %2363 = vmatmul.msk.bf16.vlgmr.msra.gmra.mxu1 %vm104_vm1, %v2806_v3 }
 0x151   :  { %v982_v62 = vpop.f32.mrf.mxu3 }
 0x152   :  { %v1040_v20 = vadd.f32 %v982_v62, %v818_v52 }
 0x153   :  { %2380 = vmatmul.msk.bf16.vlgmr.msra.gmra.mxu2 %vm104_vm1, %v2809_v7 }
 0x154   :  { %v3107_v38 = vadd.f32 %v1204_v9, %v1040_v20 }
 0x155   :  { %v575_v22 = vpop.f32.mrf.mxu1 }
 0x156   :  { %v1207_v11 = vpop.f32.mrf.mxu0  ;;  %2397 = vmatmul.msk.bf16.vlgmr.msra.gmra.mxu3 %vm104_vm1, %v1755_v63  ;;  %v763_v8 = vpop.f32.mrf.mxu2  ;;  %v576_v52 = vadd.f32 %v575_v22, %v2866_v40 }
 0x157   :  { %v819_v30 = vadd.f32 %v763_v8, %v574_v25 }
 0x159   :  { %2414 = vmatmul.msk.bf16.vlgmr.msra.gmra.mxu0 %vm104_vm1, %v2816_v10  ;;  %v985_v3 = vpop.f32.mrf.mxu3 }
 0x15a   :  { %v1041_v57 = vadd.f32 %v985_v3, %v819_v30 }
 0x15c   :  { %v3113_v26 = vadd.f32 %v1207_v11, %v1041_v57 }
 0x15d   :  { %v578_v7 = vpop.f32.mrf.mxu1 }
 0x15e   :  { %v1209_v9 = vpop.f32.mrf.mxu0  ;;  %v765_v47 = vpop.f32.mrf.mxu2  ;;  %v579_v20 = vadd.f32 %v578_v7, %v2884_v50  ;;  %v1728_v7 = vld [vmem:[#allocation2 + $0x49] sm:$0xff] }
 0x15f   :  { %v820_v43 = vadd.f32 %v765_v47, %v576_v52  ;;  %v1727_v52 = vld [vmem:[#allocation2 + $0x41] sm:$0xff] }
 0x160   :  { %2364 = vmatmul.msk.bf16.gmra.mxu1 %vm104_vm1, %v2816_v10  ;;  %v1757_v47 = vpack.c.bf16 %v1728_v7, %v1727_v52 }
 0x161   :  { %v987_v36 = vpop.f32.mrf.mxu3 }
 0x162   :  { %v1042_v24 = vadd.f32 %v987_v36, %v820_v43 }
 0x163   :  { %2381 = vmatmul.msk.bf16.gmra.mxu2 %vm104_vm1, %v2820_v14 }
 0x164   :  { %v3120_v62 = vadd.f32 %v1209_v9, %v1042_v24 }
 0x165   :  { %v580_v63 = vpop.f32.mrf.mxu1 }
 0x166   :  { %v1212_v25 = vpop.f32.mrf.mxu0  ;;  %2398 = vmatmul.msk.bf16.gmra.mxu3 %vm104_vm1, %v2796_v55  ;;  %v768_v40 = vpop.f32.mrf.mxu2  ;;  %v581_v14 = vadd.f32 %v580_v63, %v2894_v59 }
 0x167   :  { %v821_v22 = vadd.f32 %v768_v40, %v579_v20 }
 0x169   :  { %2415 = vmatmul.msk.bf16.gmra.mxu0 %vm104_vm1, %v2828_v18  ;;  %v990_v10 = vpop.f32.mrf.mxu3 }
 0x16a   :  { %v1043_v11 = vadd.f32 %v990_v10, %v821_v22 }
 0x16c   :  { %v3127_v8 = vadd.f32 %v1212_v25, %v1043_v11 }
 0x16d   :  { %v583_v30 = vpop.f32.mrf.mxu1 }
 0x16e   :  { %v1214_v3 = vpop.f32.mrf.mxu0  ;;  %v770_v57 = vpop.f32.mrf.mxu2  ;;  %v584_v36 = vadd.f32 %v583_v30, %v2912_v2  ;;  %v1729_v2 = vld [vmem:[#allocation2 + $0x51] sm:$0xff]  ;;  %v1730_v30 = vld [vmem:[#allocation2 + $0x59] sm:$0xff] }
 0x16f   :  { %v822_v50 = vadd.f32 %v770_v57, %v581_v14 }
 0x170   :  { %2365 = vmatmul.msk.bf16.gmra.mxu1 %vm104_vm1, %v2828_v18 }
 0x171   :  { %v992_v55 = vpop.f32.mrf.mxu3 }
 0x172   :  { %v1044_v9 = vadd.f32 %v992_v55, %v822_v50  ;;  %v1758_v50 = vpack.c.bf16 %v1730_v30, %v1729_v2 }
 0x173   :  { %2382 = vmatmul.msk.bf16.gmra.mxu2 %vm104_vm1, %v2832_v21 }
 0x174   :  { %v3134_v43 = vadd.f32 %v1214_v3, %v1044_v9 }
 0x175   :  { %v585_v59 = vpop.f32.mrf.mxu1 }
 0x176   :  { %v1217_v24 = vpop.f32.mrf.mxu0  ;;  %2399 = vmatmul.msk.bf16.gmra.mxu3 %vm104_vm1, %v1757_v47  ;;  %v773_v20 = vpop.f32.mrf.mxu2  ;;  %v586_v22 = vadd.f32 %v585_v59, %v2922_v13 }
 0x177   :  { %v823_v63 = vadd.f32 %v773_v20, %v584_v36 }
 0x179   :  { %2416 = vmatmul.msk.bf16.gmra.mxu0 %vm104_vm1, %v2842_v27  ;;  %v995_v18 = vpop.f32.mrf.mxu3 }
 0x17a   :  { %v1045_v25 = vadd.f32 %v995_v18, %v823_v63 }
 0x17c   :  { %v3140_v40 = vadd.f32 %v1217_v24, %v1045_v25  ;;  %v1732_v25 = vld [vmem:[#allocation2 + $0x69] sm:$0xff] }
 0x17d   :  { %v588_v21 = vpop.f32.mrf.mxu1 }
 0x17e   :  { %v1219_v10 = vpop.f32.mrf.mxu0  ;;  %v775_v11 = vpop.f32.mrf.mxu2  ;;  %v589_v7 = vadd.f32 %v588_v21, %v2940_v28  ;;  %v1731_v28 = vld [vmem:[#allocation2 + $0x61] sm:$0xff] }
 0x17f   :  { %v824_v14 = vadd.f32 %v775_v11, %v586_v22 }
 0x180   :  { %2366 = vmatmul.msk.bf16.gmra.mxu1 %vm104_vm1, %v2842_v27 }
 0x181   :  { %v997_v3 = vpop.f32.mrf.mxu3 }
 0x182   :  { %v1046_v57 = vadd.f32 %v997_v3, %v824_v14 }
 0x183   :  { %2383 = vmatmul.msk.bf16.gmra.mxu2 %vm104_vm1, %v2846_v31 }
 0x184   :  { %v3147_v52 = vadd.f32 %v1219_v10, %v1046_v57  ;;  %v1759_v10 = vpack.c.bf16 %v1732_v25, %v1731_v28 }
 0x185   :  { %v590_v13 = vpop.f32.mrf.mxu1 }
 0x186   :  { %v1222_v55 = vpop.f32.mrf.mxu0  ;;  %2400 = vmatmul.msk.bf16.gmra.mxu3 %vm104_vm1, %v1758_v50  ;;  %v778_v9 = vpop.f32.mrf.mxu2  ;;  %v591_v24 = vadd.f32 %v590_v13, %v2948_v54 }
 0x187   :  { %v825_v47 = vadd.f32 %v778_v9, %v589_v7 }
 0x189   :  { %2417 = vmatmul.msk.bf16.gmra.mxu0 %vm104_vm1, %v2868_v41  ;;  %v1000_v27 = vpop.f32.mrf.mxu3 }
 0x18a   :  { %v1047_v36 = vadd.f32 %v1000_v27, %v825_v47  ;;  %v1734_v47 = vld [vmem:[#allocation2 + $0x79] sm:$0xff] }
 0x18c   :  { %v3153_v59 = vadd.f32 %v1222_v55, %v1047_v36 }
 0x18d   :  { %v593_v31 = vpop.f32.mrf.mxu1 }
 0x18e   :  { %v1224_v20 = vpop.f32.mrf.mxu0  ;;  %v780_v63 = vpop.f32.mrf.mxu2  ;;  %v594_v14 = vadd.f32 %v593_v31, %v2860_v34  ;;  %v1733_v34 = vld [vmem:[#allocation2 + $0x71] sm:$0xff] }
 0x18f   :  { %v826_v18 = vadd.f32 %v780_v63, %v591_v24  ;;  %v1760_v24 = vpack.c.bf16 %v1734_v47, %v1733_v34  ;;  %v3497_v34 = vld [vmem:[#allocation5_spill] sm:$0xff] }
 0x190   :  { %2367 = vmatmul.msk.bf16.gmra.mxu1 %vm104_vm1, %v2868_v41 }
 0x191   :  { %v1002_v22 = vpop.f32.mrf.mxu3 }
 0x192   :  { %v1048_v21 = vadd.f32 %v1002_v22, %v826_v18  ;;  %v3494_v22 = vld [vmem:[#allocation6_spill] sm:$0xff] }
 0x193   :  { %2384 = vmatmul.msk.bf16.gmra.mxu2 %vm104_vm1, %v2874_v4 }
 0x194   :  { %v3160_v11 = vadd.f32 %v1224_v20, %v1048_v21  ;;  %v3493_v20 = vld [vmem:[#allocation3_spill] sm:$0xff] }
 0x195   :  { %v595_v54 = vpop.f32.mrf.mxu1 }
 0x196   :  { %v1227_v2 = vpop.f32.mrf.mxu0  ;;  %2401 = vmatmul.msk.bf16.gmra.mxu3 %vm104_vm1, %v1759_v10  ;;  %v783_v30 = vpop.f32.mrf.mxu2  ;;  %v596_v7 = vadd.f32 %v595_v54, %v2872_v46 }
 0x197   :  { %v827_v3 = vadd.f32 %v783_v30, %v594_v14  ;;  %v3495_v14 = vld [vmem:[#allocation4_spill] sm:$0xff] }
 0x199   :  { %2418 = vmatmul.msk.bf16.gmra.mxu0 %vm104_vm1, %v2896_v60  ;;  %v1005_v41 = vpop.f32.mrf.mxu3 }
 0x19a   :  { %v1049_v57 = vadd.f32 %v1005_v41, %v827_v3  ;;  %v1735_v41 = vld [vmem:[#allocation2 + $0x81] sm:$0xff] }
 0x19c   :  { %v3166_v50 = vadd.f32 %v1227_v2, %v1049_v57  ;;  %v1736_v57 = vld [vmem:[#allocation2 + $0x89] sm:$0xff] }
 0x19d   :  { %v598_v4 = vpop.f32.mrf.mxu1 }
 0x19e   :  { %v1229_v13 = vpop.f32.mrf.mxu0  ;;  %v785_v55 = vpop.f32.mrf.mxu2  ;;  %v599_v63 = vadd.f32 %v598_v4, %v3493_v20 }
 0x19f   :  { %v828_v9 = vadd.f32 %v785_v55, %v596_v7  ;;  %v3496_v55 = vld [vmem:[#allocation8_spill] sm:$0xff] }
 0x1a0   :  { %2368 = vmatmul.msk.bf16.gmra.mxu1 %vm104_vm1, %v2896_v60 }
 0x1a1   :  { %v1007_v27 = vpop.f32.mrf.mxu3 }
 0x1a2   :  { %v1050_v36 = vadd.f32 %v1007_v27, %v828_v9 }
 0x1a3   :  { %2385 = vmatmul.msk.bf16.gmra.mxu2 %vm104_vm1, %v2902_v23 }
 0x1a4   :  { %v3173_v31 = vadd.f32 %v1229_v13, %v1050_v36  ;;  %v1761_v13 = vpack.c.bf16 %v1736_v57, %v1735_v41 }
 0x1a5   :  { %v600_v46 = vpop.f32.mrf.mxu1 }
 0x1a6   :  { %v1232_v18 = vpop.f32.mrf.mxu0  ;;  %2402 = vmatmul.msk.bf16.gmra.mxu3 %vm104_vm1, %v1760_v24  ;;  %v788_v28 = vpop.f32.mrf.mxu2  ;;  %v601_v54 = vadd.f32 %v600_v46, %v3495_v14 }
 0x1a7   :  { %v829_v25 = vadd.f32 %v788_v28, %v599_v63  ;;  %v3498_v63 = vld [vmem:[#allocation10_spill] sm:$0xff] }
 0x1a9   :  { %2419 = vmatmul.msk.bf16.gmra.mxu0 %vm104_vm1, %v3494_v22  ;;  %v1010_v60 = vpop.f32.mrf.mxu3 }
 0x1aa   :  { %v1051_v21 = vadd.f32 %v1010_v60, %v829_v25  ;;  %v3499_v25 = vld [vmem:[#allocation7_spill] sm:$0xff] }
 0x1ac   :  { %v3179_v10 = vadd.f32 %v1232_v18, %v1051_v21 }
 0x1ad   :  { %v603_v23 = vpop.f32.mrf.mxu1 }
 0x1ae   :  { %v1234_v2 = vpop.f32.mrf.mxu0  ;;  %v790_v30 = vpop.f32.mrf.mxu2  ;;  %v604_v47 = vadd.f32 %v603_v23, %v3497_v34  ;;  %v1737_v23 = vld [vmem:[#allocation2 + $0x91] sm:$0xff] }
 0x1af   :  { %v830_v3 = vadd.f32 %v790_v30, %v601_v54 }
 0x1b0   :  { %2369 = vmatmul.msk.bf16.gmra.mxu1 %vm104_vm1, %v3494_v22 }
 0x1b1   :  { %v1012_v7 = vpop.f32.mrf.mxu3 }
 0x1b2   :  { %v1052_v4 = vadd.f32 %v1012_v7, %v830_v3  ;;  %v3500_v7 = vld [vmem:[#allocation9_spill] sm:$0xff] }
 0x1b3   :  { %2386 = vmatmul.msk.bf16.gmra.mxu2 %vm104_vm1, %v3496_v55 }
 0x1b4   :  { %v3186_v9 = vadd.f32 %v1234_v2, %v1052_v4  ;;  %v1738_v2 = vld [vmem:[#allocation2 + $0x99] sm:$0xff] }
 0x1b5   :  { %v605_v27 = vpop.f32.mrf.mxu1  ;;  %v1762_v41 = vpack.c.bf16 %v1738_v2, %v1737_v23 }
 0x1b6   :  { %v1237_v36 = vpop.f32.mrf.mxu0  ;;  %2403 = vmatmul.msk.bf16.gmra.mxu3 %vm104_vm1, %v1761_v13  ;;  %v793_v24 = vpop.f32.mrf.mxu2  ;;  %v606_v22 = vadd.f32 %v605_v27, %v3499_v25 }
 0x1b7   :  { %v831_v20 = vadd.f32 %v793_v24, %v604_v47 }
 0x1b9   :  { %2420 = vmatmul.msk.bf16.gmra.mxu0 %vm104_vm1, %v3498_v63  ;;  %v1015_v46 = vpop.f32.mrf.mxu3 }
 0x1ba   :  { %v1053_v18 = vadd.f32 %v1015_v46, %v831_v20  ;;  %v3501_v20 = vld [vmem:[#allocation11_spill] sm:$0xff] }
 0x1bc   :  { %v3192_v28 = vadd.f32 %v1237_v36, %v1053_v18 }
 0x1bd   :  { %v608_v60 = vpop.f32.mrf.mxu1 }
 0x1be   :  { %v1239_v21 = vpop.f32.mrf.mxu0  ;;  %v795_v14 = vpop.f32.mrf.mxu2  ;;  %v609_v4 = vadd.f32 %v608_v60, %v3500_v7  ;;  %v1740_v60 = vld [vmem:[#allocation2 + $0xa9] sm:$0xff] }
 0x1bf   :  { %v832_v54 = vadd.f32 %v795_v14, %v606_v22  ;;  %v1739_v22 = vld [vmem:[#allocation2 + $0xa1] sm:$0xff] }
 0x1c0   :  { %2370 = vmatmul.msk.bf16.gmra.mxu1 %vm104_vm1, %v3498_v63 }
 0x1c1   :  { %v1017_v30 = vpop.f32.mrf.mxu3 }
 0x1c2   :  { %v1054_v3 = vadd.f32 %v1017_v30, %v832_v54  ;;  %v1763_v54 = vpack.c.bf16 %v1740_v60, %v1739_v22 }
 0x1c3   :  { %2387 = vmatmul.msk.bf16.gmra.mxu2 %vm104_vm1, %v2957_v44 }
 0x1c4   :  { %v3199_v57 = vadd.f32 %v1239_v21, %v1054_v3 }
 0x1c5   :  { %v610_v13 = vpop.f32.mrf.mxu1 }
 0x1c6   :  { %v1242_v55 = vpop.f32.mrf.mxu0  ;;  %2404 = vmatmul.msk.bf16.gmra.mxu3 %vm104_vm1, %v1762_v41  ;;  %v798_v34 = vpop.f32.mrf.mxu2  ;;  %v611_v63 = vadd.f32 %v610_v13, %v3501_v20  ;;  %v3221_v13 = vld [vmem:[%s3469_s3] ss:$0 sm:$0xff] }
 0x1c7   :  { %v833_v47 = vadd.f32 %v798_v34, %v609_v4 }
 0x1c9   :  { %2421 = vmatmul.msk.bf16.gmra.mxu0 %vm104_vm1, %v2969_v15  ;;  %v1020_v27 = vpop.f32.mrf.mxu3 }
 0x1ca   :  { %v1055_v36 = vadd.f32 %v1020_v27, %v833_v47 }
 0x1cc   :  { %v3205_v24 = vadd.f32 %v1242_v55, %v1055_v36  ;;  %v3502_v55 = vld [vmem:[#allocation12_spill] sm:$0xff] }
 0x1cd   :  { %v1389_v44 = vpop.f32.mrf.mxu1 }
 0x1ce   :  { %v1244_v46 = vpop.f32.mrf.mxu0  ;;  %v800_v18 = vpop.f32.mrf.mxu2  ;;  %v1469_v2 = vadd.f32 %v1389_v44, %v2966_v6  ;;  %v1742_v44 = vld [vmem:[#allocation2 + $0xb9] sm:$0xff] }
 0x1cf   :  { %v834_v25 = vadd.f32 %v800_v18, %v611_v63  ;;  %v1741_v63 = vld [vmem:[#allocation2 + $0xb1] sm:$0xff] }
 0x1d0   :  { %2371 = vmatmul.msk.bf16.gmra.mxu1 %vm104_vm1, %v2969_v15 }
 0x1d1   :  { %v1022_v21 = vpop.f32.mrf.mxu3 }
 0x1d2   :  { %v1056_v14 = vadd.f32 %v1022_v21, %v834_v25  ;;  %v1764_v25 = vpack.c.bf16 %v1742_v44, %v1741_v63 }
 0x1d3   :  { %2388 = vmatmul.msk.bf16.gmra.mxu2 %vm104_vm1, %v2973_v17 }
 0x1d4   :  { %v3212_v23 = vadd.f32 %v1244_v46, %v1056_v14 }
 0x1d5   :  { %v1391_v30 = vpop.f32.mrf.mxu1 }
 0x1d6   :  { %v2055_v3 = vpop.f32.mrf.mxu0  ;;  %2405 = vmatmul.msk.bf16.gmra.mxu3 %vm104_vm1, %v1763_v54  ;;  %v1611_v41 = vpop.f32.mrf.mxu2  ;;  %v1470_v6 = vadd.f32 %v1391_v30, %v3502_v55 }
 0x1d7   :  { %v1691_v7 = vadd.f32 %v1611_v41, %v1469_v2 }
 0x1d9   :  { %2422 = vmatmul.msk.bf16.gmra.mxu0 %vm104_vm1, %v2987_v56  ;;  %v1833_v15 = vpop.f32.mrf.mxu3 }
 0x1da   :  { %v1913_v4 = vadd.f32 %v1833_v15, %v1691_v7 }
 0x1dc   :  { %v2135_v17 = vadd.f32 %v2055_v3, %v1913_v4 }
 0x1dd   :  { %v1394_v34 = vpop.f32.mrf.mxu1 }
 0x1de   :  { %v2171_v47 = vadd.f32 %v3221_v13, %v2135_v17  ;;  %v2057_v27 = vpop.f32.mrf.mxu0  ;;  %v1613_v36 = vpop.f32.mrf.mxu2  ;;  %v1471_v60 = vadd.f32 %v1394_v34, %v2984_v37  ;;  %v3503_v37 = vld [vmem:[#allocation13_spill] sm:$0xff] }
 0x1df   :  { %v1692_v20 = vadd.f32 %v1613_v36, %v1470_v6  ;;  %v1743_v6 = vld [vmem:[#allocation2 + $0xc1] sm:$0xff]  ;;  %v1744_v34 = vld [vmem:[#allocation2 + $0xc9] sm:$0xff] }
 0x1e0   :  { %2204 = vst.msk [vmem:[%s3470_s4] sm:$0xff] %vm2203_vm2, %v2171_v47  ;;  %2372 = vmatmul.msk.bf16.gmra.mxu1 %vm104_vm1, %v2987_v56  ;;  %v1765_v36 = vpack.c.bf16 %v1744_v34, %v1743_v6 }
 0x1e1   :  { %v1835_v46 = vpop.f32.mrf.mxu3 }
 0x1e2   :  { %v1914_v18 = vadd.f32 %v1835_v46, %v1692_v20 }
 0x1e3   :  { %2389 = vmatmul.msk.bf16.gmra.mxu2 %vm104_vm1, %v2991_v19 }
 0x1e4   :  { %v2136_v22 = vadd.f32 %v2057_v27, %v1914_v18 }
 0x1e5   :  { %v1396_v21 = vpop.f32.mrf.mxu1 }
 0x1e6   :  { %v2172_v14 = vadd.f32 %v3221_v13, %v2136_v22  ;;  %v2060_v54 = vpop.f32.mrf.mxu0  ;;  %2406 = vmatmul.msk.bf16.gmra.mxu3 %vm104_vm1, %v1764_v25  ;;  %v1616_v2 = vpop.f32.mrf.mxu2  ;;  %v1472_v41 = vadd.f32 %v1396_v21, %v3503_v37 }
 0x1e7   :  { %v1693_v30 = vadd.f32 %v1616_v2, %v1471_v60 }
 0x1e8   :  { %2205 = vst.msk [vmem:[%s3470_s4 + $0x8] sm:$0xff] %vm2203_vm2, %v2172_v14 }
 0x1e9   :  { %2423 = vmatmul.msk.bf16.gmra.mxu0 %vm104_vm1, %v3005_v45  ;;  %v1838_v56 = vpop.f32.mrf.mxu3 }
 0x1ea   :  { %v1915_v19 = vadd.f32 %v1838_v56, %v1693_v30 }
 0x1ec   :  { %v2137_v3 = vadd.f32 %v2060_v54, %v1915_v19  ;;  %v1745_v19 = vld [vmem:[#allocation2 + $0xd1] sm:$0xff] }
 0x1ed   :  { %v1399_v7 = vpop.f32.mrf.mxu1 }
 0x1ee   :  { %v2173_v15 = vadd.f32 %v3221_v13, %v2137_v3  ;;  %v2062_v4 = vpop.f32.mrf.mxu0  ;;  %v1618_v17 = vpop.f32.mrf.mxu2  ;;  %v1473_v63 = vadd.f32 %v1399_v7, %v3002_v61  ;;  %v3504_v61 = vld [vmem:[#allocation14_spill] sm:$0xff] }
 0x1ef   :  { %v1694_v55 = vadd.f32 %v1618_v17, %v1472_v41  ;;  %v1746_v3 = vld [vmem:[#allocation2 + $0xd9] sm:$0xff] }
 0x1f0   :  { %2206 = vst.msk [vmem:[%s3470_s4 + $0x10] sm:$0xff] %vm2203_vm2, %v2173_v15  ;;  %2373 = vmatmul.msk.bf16.gmra.mxu1 %vm104_vm1, %v3005_v45  ;;  %v1766_v7 = vpack.c.bf16 %v1746_v3, %v1745_v19  ;;  %v3506_v19 = vld [vmem:[#allocation15_spill] sm:$0xff] }
 0x1f1   :  { %v1840_v47 = vpop.f32.mrf.mxu3  ;;  %v2501_v3 = vunpack.c.h.bf16 %v3506_v19 }
 0x1f2   :  { %v1916_v27 = vadd.f32 %v1840_v47, %v1694_v55 }
 0x1f3   :  { %2390 = vmatmul.msk.bf16.gmra.mxu2 %vm104_vm1, %v3009_v49  ;;  %204 = vst.msk [vmem:[#allocation2 + $0x118] sm:$0xff] %vm104_vm1, %v2501_v3 }
 0x1f4   :  { %v2138_v20 = vadd.f32 %v2062_v4, %v1916_v27 }
 0x1f5   :  { %v1401_v44 = vpop.f32.mrf.mxu1 }
 0x1f6   :  { %v2174_v46 = vadd.f32 %v3221_v13, %v2138_v20  ;;  %v2065_v18 = vpop.f32.mrf.mxu0  ;;  %2407 = vmatmul.msk.bf16.gmra.mxu3 %vm104_vm1, %v1765_v36  ;;  %v1621_v25 = vpop.f32.mrf.mxu2  ;;  %v1474_v21 = vadd.f32 %v1401_v44, %v3504_v61 }
 0x1f7   :  { %v1695_v22 = vadd.f32 %v1621_v25, %v1473_v63  ;;  %v1748_v25 = vld [vmem:[#allocation2 + $0xe9] sm:$0xff] }
 0x1f8   :  { %2207 = vst.msk [vmem:[%s3470_s4 + $0x18] sm:$0xff] %vm2203_vm2, %v2174_v46 }
 0x1f9   :  { %2424 = vmatmul.msk.bf16.gmra.mxu0 %vm104_vm1, %v3022_v48  ;;  %v1843_v45 = vpop.f32.mrf.mxu3 }
 0x1fa   :  { %v1917_v49 = vadd.f32 %v1843_v45, %v1695_v22 }
 0x1fc   :  { %v2139_v60 = vadd.f32 %v2065_v18, %v1917_v49  ;;  %v1747_v18 = vld [vmem:[#allocation2 + $0xe1] sm:$0xff] }
 0x1fd   :  { %v1404_v14 = vpop.f32.mrf.mxu1  ;;  %v1767_v49 = vpack.c.bf16 %v1748_v25, %v1747_v18 }
 0x1fe   :  { %v2175_v54 = vadd.f32 %v3221_v13, %v2139_v60  ;;  %v2067_v2 = vpop.f32.mrf.mxu0  ;;  %v1623_v30 = vpop.f32.mrf.mxu2  ;;  %v1475_v4 = vadd.f32 %v1404_v14, %v3020_v42  ;;  %v3505_v60 = vld [vmem:[#allocation16_spill] sm:$0xff] }
 0x1ff   :  { %v1696_v56 = vadd.f32 %v1623_v30, %v1474_v21 }
 0x200   :  { %2208 = vst.msk [vmem:[%s3470_s4 + $0x20] sm:$0xff] %vm2203_vm2, %v2175_v54  ;;  %2374 = vmatmul.msk.bf16.gmra.mxu1 %vm104_vm1, %v3022_v48 }
 0x201   :  { %v1845_v37 = vpop.f32.mrf.mxu3 }
 0x202   :  { %v1918_v41 = vadd.f32 %v1845_v37, %v1696_v56  ;;  %v2575_v56 = vld [vmem:[%s3468_s1 + $0x90] sm:$0xff]  }
 0x203   :  { %2391 = vmatmul.msk.bf16.gmra.mxu2 %vm104_vm1, %v3026_v51  ;;  %v2504_v37 = vunpack.c.l.bf16 %v2575_v56 }
 0x204   :  { %v2140_v15 = vadd.f32 %v2067_v2, %v1918_v41 }
 0x205   :  { %v1406_v17 = vpop.f32.mrf.mxu1  ;;  %205 = vst.msk [vmem:[#allocation2 + $0x120] sm:$0xff] %vm104_vm1, %v2504_v37 }
 0x206   :  { %v2176_v55 = vadd.f32 %v3221_v13, %v2140_v15  ;;  %v2070_v6 = vpop.f32.mrf.mxu0  ;;  %2408 = vmatmul.msk.bf16.gmra.mxu3 %vm104_vm1, %v1766_v7  ;;  %v1626_v34 = vpop.f32.mrf.mxu2  ;;  %v1476_v42 = vadd.f32 %v1406_v17, %v3030_v1  ;;  %v3507_v7 = vld [vmem:[#allocation17_spill] sm:$0xff] }
 0x207   :  { %v1697_v47 = vadd.f32 %v1626_v34, %v1475_v4 }
 0x208   :  { %2209 = vst.msk [vmem:[%s3470_s4 + $0x28] sm:$0xff] %vm2203_vm2, %v2176_v55 }
 0x209   :  { %2425 = vmatmul.msk.bf16.gmra.mxu0 %vm104_vm1, %v3046_v16  ;;  %v1848_v48 = vpop.f32.mrf.mxu3 }
 0x20a   :  { %v1919_v51 = vadd.f32 %v1848_v48, %v1697_v47  ;;  %v1749_v47 = vld [vmem:[#allocation2 + $0xf1] sm:$0xff]  ;;  %v1750_v48 = vld [vmem:[#allocation2 + $0xf9] sm:$0xff] }
 0x20c   :  { %v2141_v27 = vadd.f32 %v2070_v6, %v1919_v51 }
 0x20d   :  { %v1409_v36 = vpop.f32.mrf.mxu1 }
 0x20e   :  { %v2177_v20 = vadd.f32 %v3221_v13, %v2141_v27  ;;  %v2072_v63 = vpop.f32.mrf.mxu0  ;;  %v1628_v44 = vpop.f32.mrf.mxu2  ;;  %v1477_v61 = vadd.f32 %v1409_v36, %v3505_v60 }
 0x20f   :  { %v1698_v46 = vadd.f32 %v1628_v44, %v1476_v42  ;;  %v1768_v42 = vpack.c.bf16 %v1750_v48, %v1749_v47 }
 0x210   :  { %2210 = vst.msk [vmem:[%s3470_s4 + $0x30] sm:$0xff] %vm2203_vm2, %v2177_v20  ;;  %2375 = vmatmul.msk.bf16.gmra.mxu1 %vm104_vm1, %v3046_v16 }
 0x211   :  { %v1850_v22 = vpop.f32.mrf.mxu3 }
 0x212   :  { %v1920_v45 = vadd.f32 %v1850_v22, %v1698_v46 }
 0x213   :  { %2392 = vmatmul.msk.bf16.gmra.mxu2 %vm104_vm1, %v3051_v33 }
 0x214   :  { %v2142_v1 = vadd.f32 %v2072_v63, %v1920_v45 }
 0x215   :  { %v1411_v21 = vpop.f32.mrf.mxu1 }
 0x216   :  { %v2178_v14 = vadd.f32 %v3221_v13, %v2142_v1  ;;  %v2075_v54 = vpop.f32.mrf.mxu0  ;;  %2409 = vmatmul.msk.bf16.gmra.mxu3 %vm104_vm1, %v1767_v49  ;;  %v1631_v2 = vpop.f32.mrf.mxu2  ;;  %v1478_v15 = vadd.f32 %v1411_v21, %v3507_v7 }
 0x217   :  { %v1699_v30 = vadd.f32 %v1631_v2, %v1477_v61  ;;  %v1973_v2 = vld [vmem:[#allocation2 + $0x102] sm:$0xff] }
 0x218   :  { %2211 = vst.msk [vmem:[%s3470_s4 + $0x38] sm:$0xff] %vm2203_vm2, %v2178_v14 }
 0x219   :  { %2426 = vmatmul.msk.bf16.gmra.mxu0 %vm104_vm1, %v3065_v32  ;;  %v1853_v16 = vpop.f32.mrf.mxu3 }
 0x21a   :  { %v1921_v33 = vadd.f32 %v1853_v16, %v1699_v30  ;;  %v1974_v30 = vld [vmem:[#allocation2 + $0x10a] sm:$0xff] }
 0x21b   :  { %v1991_v56 = vpack.c.bf16 %v1974_v30, %v1973_v2 }
 0x21c   :  { %v2143_v41 = vadd.f32 %v2075_v54, %v1921_v33 }
 0x21d   :  { %v1414_v4 = vpop.f32.mrf.mxu1 }
 0x21e   :  { %v2179_v17 = vadd.f32 %v3221_v13, %v2143_v41  ;;  %v2077_v55 = vpop.f32.mrf.mxu0  ;;  %v1633_v6 = vpop.f32.mrf.mxu2  ;;  %v1479_v20 = vadd.f32 %v1414_v4, %v3062_v53  ;;  %v3508_v53 = vld [vmem:[#allocation18_spill] sm:$0xff] }
 0x21f   :  { %v1700_v34 = vadd.f32 %v1633_v6, %v1478_v15  ;;  %v1531_v15 = vld [vmem:[#allocation2 + $0x110] sm:$0xff]  ;;  %v1532_v4 = vld [vmem:[#allocation2 + $0x118] sm:$0xff] }
 0x220   :  { %2212 = vst.msk [vmem:[%s3470_s4 + $0x40] sm:$0xff] %vm2203_vm2, %v2179_v17  ;;  %2376 = vmatmul.msk.bf16.gmra.mxu1 %vm104_vm1, %v3065_v32  ;;  %v1548_v48 = vpack.c.bf16 %v1532_v4, %v1531_v15 }
 0x221   :  { %v1855_v51 = vpop.f32.mrf.mxu3 }
 0x222   :  { %v1922_v27 = vadd.f32 %v1855_v51, %v1700_v34  ;;  %v1753_v51 = vld [vmem:[#allocation2 + $0x111] sm:$0xff] }
 0x223   :  { %2393 = vmatmul.msk.bf16.gmra.mxu2 %vm104_vm1, %v3069_v35 }
 0x224   :  { %v2144_v36 = vadd.f32 %v2077_v55, %v1922_v27  ;;  %v1754_v27 = vld [vmem:[#allocation2 + $0x119] sm:$0xff] }
 0x225   :  { %v1416_v63 = vpop.f32.mrf.mxu1 }
 0x226   :  { %v2180_v44 = vadd.f32 %v3221_v13, %v2144_v36  ;;  %v2080_v46 = vpop.f32.mrf.mxu0  ;;  %2410 = vmatmul.msk.bf16.gmra.mxu3 %vm104_vm1, %v1768_v42  ;;  %v1636_v18 = vpop.f32.mrf.mxu2  ;;  %v1480_v45 = vadd.f32 %v1416_v63, %v3508_v53  ;;  %v1976_v63 = vld [vmem:[#allocation2 + $0x11a] sm:$0xff] }
 0x227   :  { %v1701_v25 = vadd.f32 %v1636_v18, %v1479_v20  ;;  %v1770_v20 = vpack.c.bf16 %v1754_v27, %v1753_v51 }
 0x228   :  { %2213 = vst.msk [vmem:[%s3470_s4 + $0x48] sm:$0xff] %vm2203_vm2, %v2180_v44 }
 0x229   :  { %2427 = vmatmul.msk.bf16.gmra.mxu0 %vm104_vm1, %v3083_v29  ;;  %v1858_v32 = vpop.f32.mrf.mxu3 }
 0x22a   :  { %v1923_v35 = vadd.f32 %v1858_v32, %v1701_v25 }
 0x22c   :  { %v2145_v22 = vadd.f32 %v2080_v46, %v1923_v35 }
 0x22d   :  { %v1419_v49 = vpop.f32.mrf.mxu1 }
 0x22e   :  { %v2181_v1 = vadd.f32 %v3221_v13, %v2145_v22  ;;  %v2082_v60 = vpop.f32.mrf.mxu0  ;;  %v1638_v61 = vpop.f32.mrf.mxu2  ;;  %v1481_v33 = vadd.f32 %v1419_v49, %v3080_v39 }
 0x22f   :  { %v1702_v21 = vadd.f32 %v1638_v61, %v1480_v45 }
 0x230   :  { %2214 = vst.msk [vmem:[%s3470_s4 + $0x50] sm:$0xff] %vm2203_vm2, %v2181_v1  ;;  %2377 = vmatmul.msk.bf16.gmra.mxu1 %vm104_vm1, %v3083_v29 }
 0x231   :  { %v1860_v14 = vpop.f32.mrf.mxu3 }
 0x232   :  { %v1924_v54 = vadd.f32 %v1860_v14, %v1702_v21 }
 0x233   :  { %2394 = vmatmul.msk.bf16.gmra.mxu2 %vm104_vm1, %v3087_v12 }
 0x234   :  { %v2146_v16 = vadd.f32 %v2082_v60, %v1924_v54 }
 0x235   :  { %v1421_v19 = vpop.f32.mrf.mxu1 }
 0x236   :  { %v2182_v3 = vadd.f32 %v3221_v13, %v2146_v16  ;;  %v2085_v37 = vpop.f32.mrf.mxu0  ;;  %2411 = vmatmul.msk.bf16.gmra.mxu3 %vm104_vm1, %v3094_v58  ;;  %v1641_v41 = vpop.f32.mrf.mxu2  ;;  %v1482_v17 = vadd.f32 %v1421_v19, %v3091_v0  ;;  %v1975_v0 = vld [vmem:[#allocation2 + $0x112] sm:$0xff] }
 0x237   :  { %v1703_v29 = vadd.f32 %v1641_v41, %v1481_v33  ;;  %v1992_v18 = vpack.c.bf16 %v1976_v63, %v1975_v0 }
 0x238   :  { %2215 = vst.msk [vmem:[%s3470_s4 + $0x58] sm:$0xff] %vm2203_vm2, %v2182_v3 }
 0x239   :  { %2428 = vmatmul.msk.bf16.gmra.mxu0 %vm104_vm1, %v1991_v56  ;;  %v1863_v12 = vpop.f32.mrf.mxu3 }
 0x23a   :  { %v1925_v7 = vadd.f32 %v1863_v12, %v1703_v29 }
 0x23c   :  { %v2147_v39 = vadd.f32 %v2085_v37, %v1925_v7 }
 0x23d   :  { %v1424_v55 = vpop.f32.mrf.mxu1 }
 0x23e   :  { %v2183_v6 = vadd.f32 %v3221_v13, %v2147_v39  ;;  %v2087_v58 = vpop.f32.mrf.mxu0  ;;  %v1643_v34 = vpop.f32.mrf.mxu2  ;;  %v1483_v46 = vadd.f32 %v1424_v55, %v3100_v5 }
 0x23f   :  { %v1704_v47 = vadd.f32 %v1643_v34, %v1482_v17 }
 0x240   :  { %2216 = vst.msk [vmem:[%s3470_s4 + $0x60] sm:$0xff] %vm2203_vm2, %v2183_v6  ;;  %2378 = vmatmul.msk.bf16.gmra.mxu1 %vm104_vm1, %v1991_v56 }
 0x241   :  { %v1865_v42 = vpop.f32.mrf.mxu3 }
 0x242   :  { %v1926_v36 = vadd.f32 %v1865_v42, %v1704_v47 }
 0x243   :  { %2395 = vmatmul.msk.bf16.gmra.mxu2 %vm104_vm1, %v1548_v48 }
 0x244   :  { %v2148_v44 = vadd.f32 %v2087_v58, %v1926_v36 }
 0x245   :  { %v1426_v25 = vpop.f32.mrf.mxu1 }
 0x246   :  { %v2184_v32 = vadd.f32 %v3221_v13, %v2148_v44  ;;  %v2090_v35 = vpop.f32.mrf.mxu0  ;;  %2412 = vmatmul.msk.bf16.gmra.mxu3 %vm104_vm1, %v1770_v20  ;;  %v1646_v22 = vpop.f32.mrf.mxu2  ;;  %v1484_v5 = vadd.f32 %v1426_v25, %v3107_v38 }
 0x247   :  { %v1705_v53 = vadd.f32 %v1646_v22, %v1483_v46 }
 0x248   :  { %2217 = vst.msk [vmem:[%s3470_s4 + $0x68] sm:$0xff] %vm2203_vm2, %v2184_v32 }
 0x249   :  { %2429 = vmatmul.msk.bf16.gmra.mxu0 %vm104_vm1, %v1992_v18  ;;  %v1868_v45 = vpop.f32.mrf.mxu3 }
 0x24a   :  { %v1927_v49 = vadd.f32 %v1868_v45, %v1705_v53 }
 0x24c   :  { %v2149_v1 = vadd.f32 %v2090_v35, %v1927_v49 }
 0x24d   :  { %v1429_v60 = vpop.f32.mrf.mxu1 }
 0x24e   :  { %v2185_v61 = vadd.f32 %v3221_v13, %v2149_v1  ;;  %v2092_v21 = vpop.f32.mrf.mxu0  ;;  %v1648_v14 = vpop.f32.mrf.mxu2  ;;  %v1485_v33 = vadd.f32 %v1429_v60, %v3113_v26 }
 0x24f   :  { %v1706_v54 = vadd.f32 %v1648_v14, %v1484_v5 }
 0x250   :  { %2218 = vst.msk [vmem:[%s3470_s4 + $0x70] sm:$0xff] %vm2203_vm2, %v2185_v61 }
 0x251   :  { %v1870_v2 = vpop.f32.mrf.mxu3 }
 0x252   :  { %v1928_v30 = vadd.f32 %v1870_v2, %v1706_v54 }
 0x254   :  { %v2150_v16 = vadd.f32 %v2092_v21, %v1928_v30 }
 0x255   :  { %v1431_v56 = vpop.f32.mrf.mxu1 }
 0x256   :  { %v2186_v19 = vadd.f32 %v3221_v13, %v2150_v16  ;;  %v2095_v38 = vpop.f32.mrf.mxu0  ;;  %v1651_v3 = vpop.f32.mrf.mxu2  ;;  %v1486_v7 = vadd.f32 %v1431_v56, %v3120_v62 }
 0x257   :  { %v1707_v37 = vadd.f32 %v1651_v3, %v1485_v33 }
 0x258   :  { %2219 = vst.msk [vmem:[%s3470_s4 + $0x78] sm:$0xff] %vm2203_vm2, %v2186_v19 }
 0x259   :  { %v1873_v41 = vpop.f32.mrf.mxu3 }
 0x25a   :  { %v1929_v29 = vadd.f32 %v1873_v41, %v1707_v37 }
 0x25c   :  { %v2151_v12 = vadd.f32 %v2095_v38, %v1929_v29 }
 0x25d   :  { %v1434_v39 = vpop.f32.mrf.mxu1 }
 0x25e   :  { %v2187_v15 = vadd.f32 %v3221_v13, %v2151_v12  ;;  %v2097_v26 = vpop.f32.mrf.mxu0  ;;  %v1653_v4 = vpop.f32.mrf.mxu2  ;;  %v1487_v34 = vadd.f32 %v1434_v39, %v3127_v8 }
 0x25f   :  { %v1708_v17 = vadd.f32 %v1653_v4, %v1486_v7 }
 0x260   :  { %2220 = vst.msk [vmem:[%s3470_s4 + $0x80] sm:$0xff] %vm2203_vm2, %v2187_v15 }
 0x261   :  { %v1875_v55 = vpop.f32.mrf.mxu3 }
 0x262   :  { %v1930_v6 = vadd.f32 %v1875_v55, %v1708_v17 }
 0x264   :  { %v2152_v58 = vadd.f32 %v2097_v26, %v1930_v6 }
 0x265   :  { %v1436_v47 = vpop.f32.mrf.mxu1 }
 0x266   :  { %v2188_v48 = vadd.f32 %v3221_v13, %v2152_v58  ;;  %v2100_v62 = vpop.f32.mrf.mxu0  ;;  %v1656_v51 = vpop.f32.mrf.mxu2  ;;  %v1488_v0 = vadd.f32 %v1436_v47, %v3134_v43 }
 0x267   :  { %v1709_v27 = vadd.f32 %v1656_v51, %v1487_v34 }
 0x268   :  { %2221 = vst.msk [vmem:[%s3470_s4 + $0x88] sm:$0xff] %vm2203_vm2, %v2188_v48 }
 0x269   :  { %v1878_v42 = vpop.f32.mrf.mxu3 }
 0x26a   :  { %v1931_v36 = vadd.f32 %v1878_v42, %v1709_v27 }
 0x26c   :  { %v2153_v20 = vadd.f32 %v2100_v62, %v1931_v36 }
 0x26d   :  { %v1439_v63 = vpop.f32.mrf.mxu1 }
 0x26e   :  { %v2189_v44 = vadd.f32 %v3221_v13, %v2153_v20  ;;  %v2102_v8 = vpop.f32.mrf.mxu0  ;;  %v1658_v46 = vpop.f32.mrf.mxu2  ;;  %v1489_v22 = vadd.f32 %v1439_v63, %v3140_v40 }
 0x26f   :  { %v1710_v18 = vadd.f32 %v1658_v46, %v1488_v0 }
 0x270   :  { %2222 = vst.msk [vmem:[%s3470_s4 + $0x90] sm:$0xff] %vm2203_vm2, %v2189_v44 }
 0x271   :  { %v1880_v25 = vpop.f32.mrf.mxu3 }
 0x272   :  { %v1932_v32 = vadd.f32 %v1880_v25, %v1710_v18 }
 0x274   :  { %v2154_v35 = vadd.f32 %v2102_v8, %v1932_v32 }
 0x275   :  { %v1441_v53 = vpop.f32.mrf.mxu1 }
 0x276   :  { %v2190_v45 = vadd.f32 %v3221_v13, %v2154_v35  ;;  %v2105_v43 = vpop.f32.mrf.mxu0  ;;  %v1661_v49 = vpop.f32.mrf.mxu2  ;;  %v1490_v21 = vadd.f32 %v1441_v53, %v3147_v52 }
 0x277   :  { %v1711_v1 = vadd.f32 %v1661_v49, %v1489_v22 }
 0x278   :  { %2223 = vst.msk [vmem:[%s3470_s4 + $0x98] sm:$0xff] %vm2203_vm2, %v2190_v45 }
 0x279   :  { %v1883_v5 = vpop.f32.mrf.mxu3 }
 0x27a   :  { %v1933_v60 = vadd.f32 %v1883_v5, %v1711_v1 }
 0x27c   :  { %v2155_v61 = vadd.f32 %v2105_v43, %v1933_v60 }
 0x27d   :  { %v1444_v14 = vpop.f32.mrf.mxu1 }
 0x27e   :  { %v2191_v54 = vadd.f32 %v3221_v13, %v2155_v61  ;;  %v2107_v40 = vpop.f32.mrf.mxu0  ;;  %v1663_v2 = vpop.f32.mrf.mxu2  ;;  %v1491_v19 = vadd.f32 %v1444_v14, %v3153_v59 }
 0x27f   :  { %v1712_v30 = vadd.f32 %v1663_v2, %v1490_v21 }
 0x280   :  { %2224 = vst.msk [vmem:[%s3470_s4 + $0xa0] sm:$0xff] %vm2203_vm2, %v2191_v54 }
 0x281   :  { %v1885_v16 = vpop.f32.mrf.mxu3 }
 0x282   :  { %v1934_v33 = vadd.f32 %v1885_v16, %v1712_v30 }
 0x284   :  { %v2156_v56 = vadd.f32 %v2107_v40, %v1934_v33 }
 0x285   :  { %v1446_v38 = vpop.f32.mrf.mxu1 }
 0x286   :  { %v2192_v3 = vadd.f32 %v3221_v13, %v2156_v56  ;;  %v2110_v52 = vpop.f32.mrf.mxu0  ;;  %v1666_v37 = vpop.f32.mrf.mxu2  ;;  %v1492_v39 = vadd.f32 %v1446_v38, %v3160_v11 }
 0x287   :  { %v1713_v41 = vadd.f32 %v1666_v37, %v1491_v19 }
 0x288   :  { %2225 = vst.msk [vmem:[%s3470_s4 + $0xa8] sm:$0xff] %vm2203_vm2, %v2192_v3 }
 0x289   :  { %v1888_v29 = vpop.f32.mrf.mxu3 }
 0x28a   :  { %v1935_v12 = vadd.f32 %v1888_v29, %v1713_v41 }
 0x28c   :  { %v2157_v7 = vadd.f32 %v2110_v52, %v1935_v12 }
 0x28d   :  { %v1449_v15 = vpop.f32.mrf.mxu1 }
 0x28e   :  { %v2193_v26 = vadd.f32 %v3221_v13, %v2157_v7  ;;  %v2112_v59 = vpop.f32.mrf.mxu0  ;;  %v1668_v4 = vpop.f32.mrf.mxu2  ;;  %v1493_v34 = vadd.f32 %v1449_v15, %v3166_v50 }
 0x28f   :  { %v1714_v17 = vadd.f32 %v1668_v4, %v1492_v39 }
 0x290   :  { %2226 = vst.msk [vmem:[%s3470_s4 + $0xb0] sm:$0xff] %vm2203_vm2, %v2193_v26 }
 0x291   :  { %v1890_v55 = vpop.f32.mrf.mxu3 }
 0x292   :  { %v1936_v6 = vadd.f32 %v1890_v55, %v1714_v17 }
 0x294   :  { %v2158_v58 = vadd.f32 %v2112_v59, %v1936_v6 }
 0x295   :  { %v1451_v47 = vpop.f32.mrf.mxu1 }
 0x296   :  { %v2194_v48 = vadd.f32 %v3221_v13, %v2158_v58  ;;  %v2115_v11 = vpop.f32.mrf.mxu0  ;;  %v1671_v62 = vpop.f32.mrf.mxu2  ;;  %v1494_v20 = vadd.f32 %v1451_v47, %v3173_v31 }
 0x297   :  { %v1715_v51 = vadd.f32 %v1671_v62, %v1493_v34 }
 0x298   :  { %2227 = vst.msk [vmem:[%s3470_s4 + $0xb8] sm:$0xff] %vm2203_vm2, %v2194_v48 }
 0x299   :  { %v1893_v27 = vpop.f32.mrf.mxu3 }
 0x29a   :  { %v1937_v42 = vadd.f32 %v1893_v27, %v1715_v51 }
 0x29c   :  { %v2159_v36 = vadd.f32 %v2115_v11, %v1937_v42 }
 0x29d   :  { %v1454_v0 = vpop.f32.mrf.mxu1 }
 0x29e   :  { %v2195_v63 = vadd.f32 %v3221_v13, %v2159_v36  ;;  %v2117_v50 = vpop.f32.mrf.mxu0  ;;  %v1673_v44 = vpop.f32.mrf.mxu2  ;;  %v1495_v32 = vadd.f32 %v1454_v0, %v3179_v10 }
 0x29f   :  { %v1716_v8 = vadd.f32 %v1673_v44, %v1494_v20 }
 0x2a0   :  { %2228 = vst.msk [vmem:[%s3470_s4 + $0xc0] sm:$0xff] %vm2203_vm2, %v2195_v63 }
 0x2a1   :  { %v1895_v46 = vpop.f32.mrf.mxu3 }
 0x2a2   :  { %v1938_v18 = vadd.f32 %v1895_v46, %v1716_v8 }
 0x2a4   :  { %v2160_v25 = vadd.f32 %v2117_v50, %v1938_v18 }
 0x2a5   :  { %v1456_v35 = vpop.f32.mrf.mxu1 }
 0x2a6   :  { %v2196_v22 = vadd.f32 %v3221_v13, %v2160_v25  ;;  %v2120_v31 = vpop.f32.mrf.mxu0  ;;  %v1676_v53 = vpop.f32.mrf.mxu2  ;;  %v1496_v5 = vadd.f32 %v1456_v35, %v3186_v9 }
 0x2a7   :  { %v1717_v45 = vadd.f32 %v1676_v53, %v1495_v32 }
 0x2a8   :  { %2229 = vst.msk [vmem:[%s3470_s4 + $0xc8] sm:$0xff] %vm2203_vm2, %v2196_v22 }
 0x2a9   :  { %v1898_v43 = vpop.f32.mrf.mxu3 }
 0x2aa   :  { %v1939_v49 = vadd.f32 %v1898_v43, %v1717_v45 }
 0x2ac   :  { %v2161_v1 = vadd.f32 %v2120_v31, %v1939_v49 }
 0x2ad   :  { %v1459_v60 = vpop.f32.mrf.mxu1 }
 0x2ae   :  { %v2197_v61 = vadd.f32 %v3221_v13, %v2161_v1  ;;  %v2122_v10 = vpop.f32.mrf.mxu0  ;;  %v1678_v21 = vpop.f32.mrf.mxu2  ;;  %v1497_v30 = vadd.f32 %v1459_v60, %v3192_v28 }
 0x2af   :  { %v1718_v14 = vadd.f32 %v1678_v21, %v1496_v5 }
 0x2b0   :  { %2230 = vst.msk [vmem:[%s3470_s4 + $0xd0] sm:$0xff] %vm2203_vm2, %v2197_v61 }
 0x2b1   :  { %v1900_v54 = vpop.f32.mrf.mxu3 }
 0x2b2   :  { %v1940_v40 = vadd.f32 %v1900_v54, %v1718_v14 }
 0x2b4   :  { %v2162_v2 = vadd.f32 %v2122_v10, %v1940_v40 }
 0x2b5   :  { %v1461_v16 = vpop.f32.mrf.mxu1 }
 0x2b6   :  { %v2198_v33 = vadd.f32 %v3221_v13, %v2162_v2  ;;  %v2125_v9 = vpop.f32.mrf.mxu0  ;;  %v1681_v56 = vpop.f32.mrf.mxu2  ;;  %v1498_v37 = vadd.f32 %v1461_v16, %v3199_v57 }
 0x2b7   :  { %v1719_v19 = vadd.f32 %v1681_v56, %v1497_v30 }
 0x2b8   :  { %2231 = vst.msk [vmem:[%s3470_s4 + $0xd8] sm:$0xff] %vm2203_vm2, %v2198_v33 }
 0x2b9   :  { %v1903_v38 = vpop.f32.mrf.mxu3 }
 0x2ba   :  { %v1941_v3 = vadd.f32 %v1903_v38, %v1719_v19 }
 0x2bc   :  { %v2163_v52 = vadd.f32 %v2125_v9, %v1941_v3 }
 0x2bd   :  { %v1464_v7 = vpop.f32.mrf.mxu1 }
 0x2be   :  { %v2199_v41 = vadd.f32 %v3221_v13, %v2163_v52  ;;  %v1683_v29 = vpop.f32.mrf.mxu2  ;;  %v2127_v28 = vpop.f32.mrf.mxu0  ;;  %v1499_v59 = vadd.f32 %v1464_v7, %v3205_v24 }
 0x2bf   :  { %v1720_v12 = vadd.f32 %v1683_v29, %v1498_v37 }
 0x2c0   :  { %2232 = vst.msk [vmem:[%s3470_s4 + $0xe0] sm:$0xff] %vm2203_vm2, %v2199_v41 }
 0x2c1   :  { %v1905_v39 = vpop.f32.mrf.mxu3 }
 0x2c2   :  { %v1942_v15 = vadd.f32 %v1905_v39, %v1720_v12 }
 0x2c4   :  { %v2164_v26 = vadd.f32 %v2127_v28, %v1942_v15 }
 0x2c5   :  { %v1466_v34 = vpop.f32.mrf.mxu1 }
 0x2c6   :  { %v2200_v4 = vadd.f32 %v3221_v13, %v2164_v26  ;;  %v1686_v17 = vpop.f32.mrf.mxu2  ;;  %v2130_v55 = vpop.f32.mrf.mxu0  ;;  %v1500_v48 = vadd.f32 %v1466_v34, %v3212_v23 }
 0x2c7   :  { %v1721_v57 = vadd.f32 %v1686_v17, %v1499_v59 }
 0x2c8   :  { %2233 = vst.msk [vmem:[%s3470_s4 + $0xe8] sm:$0xff] %vm2203_vm2, %v2200_v4 }
 0x2c9   :  { %v1908_v6 = vpop.f32.mrf.mxu3 }
 0x2ca   :  { %v1943_v58 = vadd.f32 %v1908_v6, %v1721_v57 }
 0x2cc   :  { %v2165_v47 = vadd.f32 %v2130_v55, %v1943_v58 }
 0x2ce   :  { %v2201_v11 = vadd.f32 %v3221_v13, %v2165_v47  ;;  %v1688_v62 = vpop.f32.mrf.mxu2  ;;  %v2132_v42 = vpop.f32.mrf.mxu0 }
 0x2cf   :  { %v1722_v24 = vadd.f32 %v1688_v62, %v1500_v48 }
 0x2d0   :  { %2234 = vst.msk [vmem:[%s3470_s4 + $0xf0] sm:$0xff] %vm2203_vm2, %v2201_v11 }
 0x2d1   :  { %v1910_v51 = vpop.f32.mrf.mxu3 }
 0x2d2   :  { %v1944_v27 = vadd.f32 %v1910_v51, %v1722_v24 }
 0x2d4   :  { %v2166_v36 = vadd.f32 %v2132_v42, %v1944_v27 }
 0x2d6   :  { %v2202_v20 = vadd.f32 %v3221_v13, %v2166_v36 }
 0x2d8   :  { %2235 = vst.msk [vmem:[%s3470_s4 + $0xf8] sm:$0xff] %vm2203_vm2, %v2202_v20 }

</bundles_post_ra>
